<compile_context>
chip_gen: v7x
topology: tpu7x:2x2x1
jax: 0.10.0
libtpu: 0.0.40
codegen_flags: <defaults>
</compile_context>

<pallas_src>
import functools

import numpy as np
import jax
import jax.numpy as jnp
from jax.experimental import pallas as pl
from jax.experimental.pallas import tpu as pltpu

EMB_SIZE = 40   # projection embedding size
T_NUM = 22      # EEG electrode count
F1 = 40         # conv1 out channels
F2 = 40         # conv2 out channels (== BatchNorm2d(40) channels)
K1 = 25         # temporal conv kernel width
POOL_K = 75     # AvgPool2d kernel (1, 75)
POOL_S = 15     # AvgPool2d stride (1, 15)
BN_EPS = 1e-5

_VMEM_SELECT_BUDGET = 20 << 20   # working-set budget used when auto-picking b_tile


# --------------------------------------------------------------------------- kernel
def _patch_embed_kernel(x_ref, wk_ref, bc_ref, wp_ref, pool_ref, bp_ref, out_ref, *,
                        conv_len, t_pad, b_tile, pool_width, mxu_dtype):
    """One tile of b_tile samples per grid step.

    x_ref    : (1, C_pad, b_tile*T_pad)   samples concatenated on lanes, stride T_pad
    wk_ref   : (F2, K1*C_pad)             fused conv1∘conv2∘BN weight (tap-major cols)
    bc_ref   : (F2, 1)                    fused conv+BN bias (f32)
    wp_ref   : (E, F2)                    1x1 projection weight
    pool_ref : (pool_width, n_pool)       per-sample average-pool matrix (1/75 entries)
    bp_ref   : (b_tile*E, 1)              projection bias, tiled per sample (f32)
    out_ref  : (1, b_tile*E, n_pool)
    """
    x = x_ref[0]                                             # (C_pad, L)

    # im2col: stack the K1 shifted views along sublanes -> ONE deep-K MXU contraction
    # (K = K1*C_pad = 600) instead of 25 shallow dots + 24 VPU accumulate passes.
    xim = jnp.concatenate([x[:, k:k + conv_len] for k in range(K1)], axis=0)
    y = jnp.dot(wk_ref[...], xim, preferred_element_type=jnp.float32)   # (F2, conv_len)
    y = y + bc_ref[...]                                      # f32 epilogue (BN folded)

    # ELU (alpha = 1).
    y = jnp.where(y > 0, y, jnp.exp(jnp.minimum(y, 0.0)) - 1.0)

    # 1x1 projection applied BEFORE pooling: pooling and the 1x1 conv are both linear
    # and adjacent (eval-mode Dropout is identity), so they commute exactly.
    z = jnp.dot(wp_ref[...], y.astype(mxu_dtype),
                preferred_element_type=jnp.float32)          # (E, conv_len)
    zb = z.astype(mxu_dtype)

    # Gather the lane-aligned per-sample slabs onto sublanes.  Sample s starts at lane
    # s*t_pad (t_pad is a multiple of 128), and pool_width <= t_out, so no pooled
    # window ever reads a conv column that straddles a sample boundary (asserted in
    # the wrapper).
    zs = jnp.concatenate([zb[:, s * t_pad: s * t_pad + pool_width] for s in range(b_tile)],
                         axis=0)                             # (b_tile*E, pool_width)

    # AvgPool2d((1,75),(1,15)) for all samples: one MXU dot with a b_tile-independent
    # (pool_width, n_pool) matrix.  Output lane dim is n_pool (<128 -> masked stores),
    # accepted: the per-step output slab is tiny and this avoids an in-kernel transpose.
    pooled = jnp.dot(zs, pool_ref[...], preferred_element_type=jnp.float32)

    # Dropout(0.5): identity in inference mode.
    # TODO(synk): training-mode dropout / batch-statistic BatchNorm are not implemented
    #             (this kernel reproduces eval()-mode forward semantics).
    out_ref[0] = (pooled + bp_ref[...]).astype(out_ref.dtype)


# --------------------------------------------------------------------------- wrapper
@functools.lru_cache(maxsize=None)
def _pool_matrix_np(pool_width, n_pool):
    """Per-sample (pool_width, n_pool) average-pool matrix; host-side, cached."""
    t = np.arange(pool_width)[:, None]
    p = np.arange(n_pool)[None, :]
    return (((t >= p * POOL_S) & (t < p * POOL_S + POOL_K)).astype(np.float32) / POOL_K)


def _fold_params(params, mxu_dtype):
    """Fold conv1 ∘ conv2 ∘ BatchNorm(eval) into one weight/bias; runs ONCE per model."""
    hp = jax.lax.Precision.HIGHEST
    f2, _, c, _ = params["w2"].shape
    e = params["wp"].shape[0]
    assert params["w1"].shape[-1] == K1
    c_pad = -(-c // 8) * 8                                   # sublane-aligned channel pad

    w1 = params["w1"][:, 0, 0, :]                            # (F1, K1)
    w2 = params["w2"][:, :, :, 0]                            # (F2, F1, C)
    wf = jnp.einsum('gfc,fk->gck', w2, w1, precision=hp)     # (F2, C, K1)
    bf = params["b2"] + jnp.einsum('gfc,f->g', w2, params["b1"], precision=hp)
    scale = params["bn_gamma"] * jax.lax.rsqrt(params["bn_var"] + BN_EPS)
    wf = wf * scale[:, None, None]
    bf = scale * (bf - params["bn_mean"]) + params["bn_beta"]

    wf = jnp.pad(wf, ((0, 0), (0, c_pad - c), (0, 0)))       # (F2, C_pad, K1), zero pad
    wk = jnp.transpose(wf, (0, 2, 1)).reshape(f2, K1 * c_pad).astype(mxu_dtype)
    return {
        "wk": wk,                                            # (F2, K1*C_pad), tap-major cols
        "bconv": bf.reshape(f2, 1).astype(jnp.float32),      # f32 epilogue
        "wpe": params["wp"][:, :, 0, 0].astype(mxu_dtype),   # (E, F2)
        "bproj": params["bp"].astype(jnp.float32),           # (E,)
        "c": int(c), "c_pad": int(c_pad), "f2": int(f2), "e": int(e),
    }


def _forward_impl(x, fp, *, b_tile, mxu_dtype):
    B, one, C, T = x.shape
    assert one == 1 and C == fp["c"], (x.shape, fp["c"])
    t_out = T - K1 + 1
    assert t_out >= POOL_K, "time axis too short for (1,25) conv followed by (1,75) pool"
    n_pool = (t_out - POOL_K) // POOL_S + 1
    pool_width = (n_pool - 1) * POOL_S + POOL_K
    # Pooled windows only read per-sample conv columns [0, pool_width) <= t_out, so no
    # window ever touches a conv column that mixes two samples / the zero time-pad.
    assert pool_width <= t_out

    c_pad, f2, E = fp["c_pad"], fp["f2"], fp["e"]
    T_pad = -(-T // 128) * 128                               # lane-aligned sample stride
    mb = jnp.dtype(mxu_dtype).itemsize

    def vmem_bytes(bt):                                      # per-step VMEM working set
        L = bt * T_pad
        cl = L - K1 + 1
        return (2 * c_pad * L * mb                           # input block (double-buffered)
                + K1 * c_pad * cl * mb                       # im2col operand
                + 2 * f2 * cl * 4                            # conv out + projected (f32)
                + f2 * cl * mb                               # mxu_dtype copy for pooling
                + bt * E * pool_width * mb                   # per-sample stacked slabs
                + 3 * bt * E * n_pool * 4                    # pooled + output block (x2)
                + 2 * (f2 * K1 * c_pad + E * f2 + pool_width * n_pool) * mb  # weights
                + 2 * (f2 + bt * E) * 4)                     # biases

    if b_tile is None:
        # >= 2 grid steps when B > 1: v7x has 2 TensorCores and the parallel grid axis
        # is what shards across them (costs ~0.35us extra step on single-TC v5e/v6e).
        b_tile = max(1, -(-B // 2))
        while b_tile > 1 and vmem_bytes(b_tile) > _VMEM_SELECT_BUDGET:
            b_tile -= 1
    b_tile = max(1, min(int(b_tile), B))
    n_steps = -(-B // b_tile)
    B_pad = n_steps * b_tile
    L = b_tile * T_pad
    conv_len = L - K1 + 1

    # Scoped VMEM: computed from footprint, normally capped at 32 MiB (v7x: 64 MiB phys).
    footprint = vmem_bytes(b_tile)
    vlimit = int(max(min(32 << 20, max(16 << 20, footprint + (8 << 20))),
                     footprint + (2 << 20)))

    pool_mat = jnp.asarray(_pool_matrix_np(pool_width, n_pool), dtype=mxu_dtype)
    bias_rows = jnp.tile(fp["bproj"], b_tile).reshape(b_tile * E, 1)

    # Input relayout: (B,1,C,T) -> (n_steps, C_pad, b_tile*T_pad); bf16 cast fused in.
    xs = x[:, 0].astype(mxu_dtype)
    xs = jnp.pad(xs, ((0, B_pad - B), (0, c_pad - C), (0, T_pad - T)))
    xt = xs.reshape(n_steps, b_tile, c_pad, T_pad).transpose(0, 2, 1, 3)
    xt = xt.reshape(n_steps, c_pad, L)

    kernel = functools.partial(_patch_embed_kernel, conv_len=conv_len, t_pad=T_pad,
                               b_tile=b_tile, pool_width=pool_width, mxu_dtype=mxu_dtype)

    out = pl.pallas_call(
        kernel,
        out_shape=jax.ShapeDtypeStruct((n_steps, b_tile * E, n_pool), jnp.float32),
        grid=(n_steps,),
        in_specs=[
            pl.BlockSpec((1, c_pad, L), lambda i: (i, 0, 0)),        # x tile
            pl.BlockSpec((f2, K1 * c_pad), lambda i: (0, 0)),        # fused conv weight
            pl.BlockSpec((f2, 1), lambda i: (0, 0)),                 # fused conv+BN bias
            pl.BlockSpec((E, f2), lambda i: (0, 0)),                 # projection weight
            pl.BlockSpec((pool_width, n_pool), lambda i: (0, 0)),    # pooling matrix
            pl.BlockSpec((b_tile * E, 1), lambda i: (0, 0)),         # projection bias
        ],
        out_specs=pl.BlockSpec((1, b_tile * E, n_pool), lambda i: (i, 0, 0)),
        compiler_params=pltpu.CompilerParams(
            dimension_semantics=("parallel",),
            vmem_limit_bytes=vlimit,
        ),
    )(xt, fp["wk"], fp["bconv"], fp["wpe"], pool_mat, bias_rows)

    # (n_steps, b_tile*E, n_pool) -> (B, n_pool, E): tiny post-processing slab.
    out = out.reshape(n_steps, b_tile, E, n_pool).transpose(0, 1, 3, 2)
    return out.reshape(B_pad, n_pool, E)[:B]


def make_patch_embedding(params, *, mxu_dtype=jnp.bfloat16):
    """Fold the weights once and return a jitted forward(x, b_tile=None) closure."""
    folded = _fold_params(params, mxu_dtype)

    @functools.partial(jax.jit, static_argnames=("b_tile",))
    def forward(x, b_tile=None):
        return _forward_impl(x, folded, b_tile=b_tile, mxu_dtype=mxu_dtype)

    return forward


def patch_embedding_forward(x, params, *, b_tile=None, mxu_dtype=jnp.bfloat16):
    """Convenience one-shot wrapper (re-folds weights; prefer make_patch_embedding)."""
    return make_patch_embedding(params, mxu_dtype=mxu_dtype)(x, b_tile=b_tile)


# --------------------------------------------------------------------------- reference
def reference_forward(x, params):
    """Plain-JAX reference of the same eval-mode forward (HIGHEST-precision matmuls)."""
    hp = jax.lax.Precision.HIGHEST
    B, _, C, T = x.shape
    t_out = T - K1 + 1
    w1 = params["w1"][:, 0, 0, :]
    xs = jnp.stack([x[:, 0, :, k:k + t_out] for k in range(K1)], axis=-1)
    y1 = jnp.einsum('bctk,fk->bfct', xs, w1, precision=hp) + params["b1"][None, :, None, None]
    w2 = params["w2"][:, :, :, 0]
    y2 = jnp.einsum('bfct,gfc->bgt', y1, w2, precision=hp) + params["b2"][None, :, None]
    inv = jax.lax.rsqrt(params["bn_var"] + BN_EPS)
    y3 = ((y2 - params["bn_mean"][None, :, None]) * (inv * params["bn_gamma"])[None, :, None]
          + params["bn_beta"][None, :, None])
    y4 = jnp.where(y3 > 0, y3, jnp.exp(jnp.minimum(y3, 0.0)) - 1.0)
    n_pool = (t_out - POOL_K) // POOL_S + 1
    pooled = jnp.stack([y4[:, :, p * POOL_S:p * POOL_S + POOL_K].mean(-1)
                        for p in range(n_pool)], axis=-1)               # (B, F2, n_pool)
    wp = params["wp"][:, :, 0, 0]
    return jnp.einsum('bgp,eg->bpe', pooled, wp, precision=hp) + params["bp"][None, None, :]


# --------------------------------------------------------------------------- demo
if __name__ == "__main__":
    key = jax.random.PRNGKey(0)
    ks = jax.random.split(key, 12)

    # Deterministic synthetic parameters (shapes follow the nn.Module __init__).
    params = {
        "w1": 0.10 * jax.random.normal(ks[0], (F1, 1, 1, K1), jnp.float32),
        "b1": 0.10 * jax.random.normal(ks[1], (F1,), jnp.float32),
        "w2": 0.05 * jax.random.normal(ks[2], (F2, F1, T_NUM, 1), jnp.float32),
        "b2": 0.10 * jax.random.normal(ks[3], (F2,), jnp.float32),
        "bn_gamma": 1.0 + 0.10 * jax.random.normal(ks[4], (F2,), jnp.float32),
        "bn_beta": 0.10 * jax.random.normal(ks[5], (F2,), jnp.float32),
        "bn_mean": 0.10 * jax.random.normal(ks[6], (F2,), jnp.float32),
        "bn_var": 1.0 + 0.10 * jnp.abs(jax.random.normal(ks[7], (F2,), jnp.float32)),
        "wp": 0.10 * jax.random.normal(ks[8], (EMB_SIZE, F2, 1, 1), jnp.float32),
        "bp": 0.10 * jax.random.normal(ks[9], (EMB_SIZE,), jnp.float32),
    }

    # Kernel widths 25/75 force T >= 99; use T = 200.  B=4 auto-tiles to b_tile=2
    # (two parallel grid steps -> both v7x TensorCores exercised).
    B, T = 4, 200
    n_pool = (T - K1 + 1 - POOL_K) // POOL_S + 1
    x = jax.random.normal(ks[10], (B, 1, T_NUM, T), jnp.float32)

    fwd_bf16 = make_patch_embedding(params)                  # bf16 MXU operands (default)
    out = jax.block_until_ready(fwd_bf16(x))
    ref = jax.block_until_ready(reference_forward(x, params))
    assert out.shape == ref.shape == (B, n_pool, EMB_SIZE), out.shape
    err = float(jnp.max(jnp.abs(out - ref)))
    # bf16 MXU operands (conv / pooling / projection) with f32 accumulation.
    assert jnp.allclose(out, ref, rtol=3e-2, atol=3e-2), err

    # f32-operand path; B=3 exercises batch padding (b_tile=2 -> last step half-padded).
    B2 = 3
    x2 = jax.random.normal(ks[11], (B2, 1, T_NUM, T), jnp.float32)
    fwd_f32 = make_patch_embedding(params, mxu_dtype=jnp.float32)
    out2 = jax.block_until_ready(fwd_f32(x2))
    ref2 = jax.block_until_ready(reference_forward(x2, params))
    assert out2.shape == ref2.shape == (B2, n_pool, EMB_SIZE), out2.shape
    err2 = float(jnp.max(jnp.abs(out2 - ref2)))
    assert jnp.allclose(out2, ref2, rtol=1e-2, atol=1e-2), err2

    print("KERNEL_OK")
</pallas_src>

<mosaic_0001>
module attributes {stable_mosaic.version = 11 : i64} {
  func.func @_patch_embed_kernel(%arg0: i32, %arg1: memref<1x24x512xbf16, #tpu.memory_space<vmem>>, %arg2: memref<40x600xbf16, #tpu.memory_space<vmem>>, %arg3: memref<40x1xf32, #tpu.memory_space<vmem>>, %arg4: memref<40x40xbf16, #tpu.memory_space<vmem>>, %arg5: memref<165x7xbf16, #tpu.memory_space<vmem>>, %arg6: memref<80x1xf32, #tpu.memory_space<vmem>>, %arg7: memref<1x80x7xf32, #tpu.memory_space<vmem>>) attributes {dimension_semantics = [#tpu.dimension_semantics<parallel>], iteration_bounds = array<i64: 2>, scalar_prefetch = 0 : i64, scratch_operands = 0 : i64, tpu.core_type = #tpu.core_type<tc>, window_params = [{transform_indices = @transform_0, window_bounds = array<i64: 1, 24, 512>}, {pipeline_mode = #tpu.pipeline_mode<synchronous>, transform_indices = @transform_1, window_bounds = array<i64: 40, 600>}, {pipeline_mode = #tpu.pipeline_mode<synchronous>, transform_indices = @transform_2, window_bounds = array<i64: 40, 1>}, {pipeline_mode = #tpu.pipeline_mode<synchronous>, transform_indices = @transform_3, window_bounds = array<i64: 40, 40>}, {pipeline_mode = #tpu.pipeline_mode<synchronous>, transform_indices = @transform_4, window_bounds = array<i64: 165, 7>}, {pipeline_mode = #tpu.pipeline_mode<synchronous>, transform_indices = @transform_5, window_bounds = array<i64: 80, 1>}, {transform_indices = @transform_6, window_bounds = array<i64: 1, 80, 7>}]} {
    %c0 = arith.constant 0 : index
    %c0_0 = arith.constant 0 : index
    %c0_1 = arith.constant 0 : index
    %0 = vector.load %arg1[%c0, %c0_0, %c0_1] : memref<1x24x512xbf16, #tpu.memory_space<vmem>>, vector<1x24x512xbf16>
    %1 = vector.shape_cast %0 : vector<1x24x512xbf16> to vector<24x512xbf16>
    %2 = vector.extract_strided_slice %1 {offsets = [0, 0], sizes = [24, 488], strides = [1, 1]} : vector<24x512xbf16> to vector<24x488xbf16>
    %3 = vector.extract_strided_slice %1 {offsets = [0, 1], sizes = [24, 488], strides = [1, 1]} : vector<24x512xbf16> to vector<24x488xbf16>
    %4 = vector.extract_strided_slice %1 {offsets = [0, 2], sizes = [24, 488], strides = [1, 1]} : vector<24x512xbf16> to vector<24x488xbf16>
    %5 = vector.extract_strided_slice %1 {offsets = [0, 3], sizes = [24, 488], strides = [1, 1]} : vector<24x512xbf16> to vector<24x488xbf16>
    %6 = vector.extract_strided_slice %1 {offsets = [0, 4], sizes = [24, 488], strides = [1, 1]} : vector<24x512xbf16> to vector<24x488xbf16>
    %7 = vector.extract_strided_slice %1 {offsets = [0, 5], sizes = [24, 488], strides = [1, 1]} : vector<24x512xbf16> to vector<24x488xbf16>
    %8 = vector.extract_strided_slice %1 {offsets = [0, 6], sizes = [24, 488], strides = [1, 1]} : vector<24x512xbf16> to vector<24x488xbf16>
    %9 = vector.extract_strided_slice %1 {offsets = [0, 7], sizes = [24, 488], strides = [1, 1]} : vector<24x512xbf16> to vector<24x488xbf16>
    %10 = vector.extract_strided_slice %1 {offsets = [0, 8], sizes = [24, 488], strides = [1, 1]} : vector<24x512xbf16> to vector<24x488xbf16>
    %11 = vector.extract_strided_slice %1 {offsets = [0, 9], sizes = [24, 488], strides = [1, 1]} : vector<24x512xbf16> to vector<24x488xbf16>
    %12 = vector.extract_strided_slice %1 {offsets = [0, 10], sizes = [24, 488], strides = [1, 1]} : vector<24x512xbf16> to vector<24x488xbf16>
    %13 = vector.extract_strided_slice %1 {offsets = [0, 11], sizes = [24, 488], strides = [1, 1]} : vector<24x512xbf16> to vector<24x488xbf16>
    %14 = vector.extract_strided_slice %1 {offsets = [0, 12], sizes = [24, 488], strides = [1, 1]} : vector<24x512xbf16> to vector<24x488xbf16>
    %15 = vector.extract_strided_slice %1 {offsets = [0, 13], sizes = [24, 488], strides = [1, 1]} : vector<24x512xbf16> to vector<24x488xbf16>
    %16 = vector.extract_strided_slice %1 {offsets = [0, 14], sizes = [24, 488], strides = [1, 1]} : vector<24x512xbf16> to vector<24x488xbf16>
    %17 = vector.extract_strided_slice %1 {offsets = [0, 15], sizes = [24, 488], strides = [1, 1]} : vector<24x512xbf16> to vector<24x488xbf16>
    %18 = vector.extract_strided_slice %1 {offsets = [0, 16], sizes = [24, 488], strides = [1, 1]} : vector<24x512xbf16> to vector<24x488xbf16>
    %19 = vector.extract_strided_slice %1 {offsets = [0, 17], sizes = [24, 488], strides = [1, 1]} : vector<24x512xbf16> to vector<24x488xbf16>
    %20 = vector.extract_strided_slice %1 {offsets = [0, 18], sizes = [24, 488], strides = [1, 1]} : vector<24x512xbf16> to vector<24x488xbf16>
    %21 = vector.extract_strided_slice %1 {offsets = [0, 19], sizes = [24, 488], strides = [1, 1]} : vector<24x512xbf16> to vector<24x488xbf16>
    %22 = vector.extract_strided_slice %1 {offsets = [0, 20], sizes = [24, 488], strides = [1, 1]} : vector<24x512xbf16> to vector<24x488xbf16>
    %23 = vector.extract_strided_slice %1 {offsets = [0, 21], sizes = [24, 488], strides = [1, 1]} : vector<24x512xbf16> to vector<24x488xbf16>
    %24 = vector.extract_strided_slice %1 {offsets = [0, 22], sizes = [24, 488], strides = [1, 1]} : vector<24x512xbf16> to vector<24x488xbf16>
    %25 = vector.extract_strided_slice %1 {offsets = [0, 23], sizes = [24, 488], strides = [1, 1]} : vector<24x512xbf16> to vector<24x488xbf16>
    %26 = vector.extract_strided_slice %1 {offsets = [0, 24], sizes = [24, 488], strides = [1, 1]} : vector<24x512xbf16> to vector<24x488xbf16>
    %27 = tpu.concatenate %2, %3, %4, %5, %6, %7, %8, %9, %10, %11, %12, %13, %14, %15, %16, %17 in 0 : vector<24x488xbf16>, vector<24x488xbf16>, vector<24x488xbf16>, vector<24x488xbf16>, vector<24x488xbf16>, vector<24x488xbf16>, vector<24x488xbf16>, vector<24x488xbf16>, vector<24x488xbf16>, vector<24x488xbf16>, vector<24x488xbf16>, vector<24x488xbf16>, vector<24x488xbf16>, vector<24x488xbf16>, vector<24x488xbf16>, vector<24x488xbf16> -> vector<384x488xbf16>
    %28 = tpu.concatenate %18, %19, %20, %21, %22, %23, %24, %25, %26 in 0 : vector<24x488xbf16>, vector<24x488xbf16>, vector<24x488xbf16>, vector<24x488xbf16>, vector<24x488xbf16>, vector<24x488xbf16>, vector<24x488xbf16>, vector<24x488xbf16>, vector<24x488xbf16> -> vector<216x488xbf16>
    %29 = tpu.concatenate %27, %28 in 0 : vector<384x488xbf16>, vector<216x488xbf16> -> vector<600x488xbf16>
    %c0_2 = arith.constant 0 : index
    %c0_3 = arith.constant 0 : index
    %30 = vector.load %arg2[%c0_2, %c0_3] : memref<40x600xbf16, #tpu.memory_space<vmem>>, vector<40x600xbf16>
    %cst = arith.constant dense<0.000000e+00> : vector<40x488xf32>
    %31 = tpu.matmul %30, %29, %cst {dimension_numbers = #tpu.dot_dimension_numbers<[1], [0], [0], [1], [0, 0, 1, 1], [], []>} : vector<40x600xbf16>, vector<600x488xbf16>, vector<40x488xf32> -> vector<40x488xf32>
    %c0_4 = arith.constant 0 : index
    %c0_5 = arith.constant 0 : index
    %32 = vector.load %arg3[%c0_4, %c0_5] : memref<40x1xf32, #tpu.memory_space<vmem>>, vector<40x1xf32>
    %33 = vector.broadcast %32 : vector<40x1xf32> to vector<40x488xf32>
    %34 = arith.addf %31, %33 : vector<40x488xf32>
    %cst_6 = arith.constant 0.000000e+00 : f32
    %35 = vector.broadcast %cst_6 : f32 to vector<40x488xf32>
    %36 = arith.cmpf ogt, %34, %35 : vector<40x488xf32>
    %cst_7 = arith.constant 0.000000e+00 : f32
    %37 = vector.broadcast %cst_7 : f32 to vector<40x488xf32>
    %38 = arith.minimumf %34, %37 : vector<40x488xf32>
    %39 = math.exp %38 : vector<40x488xf32>
    %cst_8 = arith.constant 1.000000e+00 : f32
    %40 = vector.broadcast %cst_8 : f32 to vector<40x488xf32>
    %41 = arith.subf %39, %40 : vector<40x488xf32>
    %42 = arith.select %36, %34, %41 : vector<40x488xi1>, vector<40x488xf32>
    %c0_9 = arith.constant 0 : index
    %c0_10 = arith.constant 0 : index
    %43 = vector.load %arg4[%c0_9, %c0_10] : memref<40x40xbf16, #tpu.memory_space<vmem>>, vector<40x40xbf16>
    %44 = arith.truncf %42 : vector<40x488xf32> to vector<40x488xbf16>
    %cst_11 = arith.constant dense<0.000000e+00> : vector<40x488xf32>
    %45 = tpu.matmul %43, %44, %cst_11 {dimension_numbers = #tpu.dot_dimension_numbers<[1], [0], [0], [1], [0, 0, 1, 1], [], []>} : vector<40x40xbf16>, vector<40x488xbf16>, vector<40x488xf32> -> vector<40x488xf32>
    %46 = arith.truncf %45 : vector<40x488xf32> to vector<40x488xbf16>
    %47 = vector.extract_strided_slice %46 {offsets = [0, 0], sizes = [40, 165], strides = [1, 1]} : vector<40x488xbf16> to vector<40x165xbf16>
    %48 = vector.extract_strided_slice %46 {offsets = [0, 256], sizes = [40, 165], strides = [1, 1]} : vector<40x488xbf16> to vector<40x165xbf16>
    %49 = tpu.concatenate %47, %48 in 0 : vector<40x165xbf16>, vector<40x165xbf16> -> vector<80x165xbf16>
    %c0_12 = arith.constant 0 : index
    %c0_13 = arith.constant 0 : index
    %50 = vector.load %arg5[%c0_12, %c0_13] : memref<165x7xbf16, #tpu.memory_space<vmem>>, vector<165x7xbf16>
    %cst_14 = arith.constant dense<0.000000e+00> : vector<80x7xf32>
    %51 = tpu.matmul %49, %50, %cst_14 {dimension_numbers = #tpu.dot_dimension_numbers<[1], [0], [0], [1], [0, 0, 1, 1], [], []>} : vector<80x165xbf16>, vector<165x7xbf16>, vector<80x7xf32> -> vector<80x7xf32>
    %c0_15 = arith.constant 0 : index
    %c0_16 = arith.constant 0 : index
    %52 = vector.load %arg6[%c0_15, %c0_16] : memref<80x1xf32, #tpu.memory_space<vmem>>, vector<80x1xf32>
    %53 = vector.broadcast %52 : vector<80x1xf32> to vector<80x7xf32>
    %54 = arith.addf %51, %53 : vector<80x7xf32>
    %c0_17 = arith.constant 0 : index
    %c0_18 = arith.constant 0 : index
    %c0_19 = arith.constant 0 : index
    %55 = vector.load %arg7[%c0_17, %c0_18, %c0_19] : memref<1x80x7xf32, #tpu.memory_space<vmem>>, vector<1x80x7xf32>
    %56 = vector.shape_cast %55 : vector<1x80x7xf32> to vector<80x7xf32>
    %57 = vector.shape_cast %54 : vector<80x7xf32> to vector<1x80x7xf32>
    tpu.vector_store %arg7[%c0_17, %c0_18, %c0_19], %57 {strides = array<i32>} : memref<1x80x7xf32, #tpu.memory_space<vmem>>, vector<1x80x7xf32>,
    return
  }
  func.func @transform_0(%arg0: i32) -> (i32, i32, i32) {
    %c0_i32 = arith.constant 0 : i32
    %c0_i32_0 = arith.constant 0 : i32
    %c0_i32_1 = arith.constant 0 : i32
    return %arg0, %c0_i32, %c0_i32_0 : i32, i32, i32
  }
  func.func @transform_1(%arg0: i32) -> (i32, i32) {
    %c0_i32 = arith.constant 0 : i32
    %c0_i32_0 = arith.constant 0 : i32
    %c0_i32_1 = arith.constant 0 : i32
    return %c0_i32, %c0_i32_0 : i32, i32
  }
  func.func @transform_2(%arg0: i32) -> (i32, i32) {
    %c0_i32 = arith.constant 0 : i32
    %c0_i32_0 = arith.constant 0 : i32
    %c0_i32_1 = arith.constant 0 : i32
    return %c0_i32, %c0_i32_0 : i32, i32
  }
  func.func @transform_3(%arg0: i32) -> (i32, i32) {
    %c0_i32 = arith.constant 0 : i32
    %c0_i32_0 = arith.constant 0 : i32
    %c0_i32_1 = arith.constant 0 : i32
    return %c0_i32, %c0_i32_0 : i32, i32
  }
  func.func @transform_4(%arg0: i32) -> (i32, i32) {
    %c0_i32 = arith.constant 0 : i32
    %c0_i32_0 = arith.constant 0 : i32
    %c0_i32_1 = arith.constant 0 : i32
    return %c0_i32, %c0_i32_0 : i32, i32
  }
  func.func @transform_5(%arg0: i32) -> (i32, i32) {
    %c0_i32 = arith.constant 0 : i32
    %c0_i32_0 = arith.constant 0 : i32
    %c0_i32_1 = arith.constant 0 : i32
    return %c0_i32, %c0_i32_0 : i32, i32
  }
  func.func @transform_6(%arg0: i32) -> (i32, i32, i32) {
    %c0_i32 = arith.constant 0 : i32
    %c0_i32_0 = arith.constant 0 : i32
    %c0_i32_1 = arith.constant 0 : i32
    return %arg0, %c0_i32, %c0_i32_0 : i32, i32, i32
  }
}

</mosaic_0001>

<bundles_post_ra>
// kernel: tile.6
= control target key start
LH: loop header
LB: loop body
LE: loop exit
PB: predicated region body
PF: predicated region fallthrough
CT: control target
= control target key end

     0   :  { %s22_s0 = inlined_call_operand.vmem [shape: f32[40], index: 0, kind: input, shape index: {}]   ;;  %s23_s1 = inlined_call_operand.vmem [shape: f32[2,40], index: 1, kind: output, shape index: {}]  }
   0x1   :  { %v4_v0 = vld [vmem:[%s22_s0] ss:$0 sm:$0xff] }
   0x2   :  { %5 = vst [vmem:[%s23_s1] sm:$0x3] %v4_v0 }

// kernel: tile.0
= control target key start
LH: loop header
LB: loop body
LE: loop exit
PB: predicated region body
PF: predicated region fallthrough
CT: control target
= control target key end

     0   :  { %s338_s8 = smov 125   ;;  %s339_s9 = smov 126   ;;  %vm7_vm0 = vcmask 7168   ;;  %s549_s0 = inlined_call_operand.vmem [shape: f32[2,40], index: 0, kind: input, shape index: {}]   ;;  %s550_s1 = inlined_call_operand.vmem [shape: f32[80,1], index: 1, kind: output, shape index: {}]  }
   0x1   :  { %v4_v0 = vld [vmem:[%s549_s0] sm:$0x3]  ;;  %s337_s0 = smov 127   ;;  %s340_s10 = smov 124  }
   0x2   :  { %5 = vst [vmem:[#allocation0] sm:$0x3] %v4_v0  ;;  %s341_s11 = smov 123   ;;  %s342_s12 = smov 122  }
   0x3   :  { %s343_s13 = smov 121   ;;  %s344_s14 = smov 120  }
   0x4   :  { %s345_s15 = smov 119   ;;  %s346_s16 = smov 118  }
   0x5   :  { %s347_s17 = smov 117   ;;  %s348_s18 = smov 116  }
   0x6   :  { %s349_s19 = smov 115   ;;  %s350_s20 = smov 114  }
   0x7   :  { %s351_s21 = smov 113   ;;  %s352_s22 = smov 112  }
   0x8   :  { %s353_s23 = smov 111   ;;  %s354_s24 = smov 110  }
   0x9   :  { %v9_v1 = vld [vmem:[#allocation0] sm:$0x3]   ;;  %s355_s25 = smov 109   ;;  %s356_s26 = smov 108  }
   0xa   :  { %v21_v2 = vld [vmem:[#allocation0] sm:$0x3]   ;;  %10 = vrot.lane.b32.xlu0 %v9_v1, %s337_s0  ;;  %s148_s27 = smov 3  ;;  %s357_s28 = smov 107  }
   0xb   :  { %22 = vrot.lane.b32.xlu1 %v21_v2, %s338_s8  ;;  %v15_v3 = vld [vmem:[#allocation0] sm:$0x3]   ;;  %s358_s29 = smov 106   ;;  %s156_s30 = smov 3 }
   0xc   :  { %v27_v4 = vld [vmem:[#allocation0] sm:$0x3]   ;;  %s164_s2 = smov 3  ;;  %s359_s3 = smov 105  }
   0xd   :  { %v33_v5 = vld [vmem:[#allocation0] sm:$0x3]   ;;  %s360_s4 = smov 104   ;;  %s172_s5 = smov 3 }
   0xe   :  { %16 = vrot.lane.b32.xlu0 %v15_v3, %s339_s9  ;;  %v39_v6 = vld [vmem:[#allocation0] sm:$0x3]   ;;  %s180_s6 = smov 3  ;;  %s361_s7 = smov 103  }
   0xf   :  { %28 = vrot.lane.b32.xlu1 %v27_v4, %s340_s10  ;;  %v45_v7 = vld [vmem:[#allocation0] sm:$0x3]   ;;  %s362_s0 = smov 102   ;;  %s188_s8 = smov 3 }
  0x10   :  { %v51_v8 = vld [vmem:[#allocation0] sm:$0x3]   ;;  %s196_s9 = smov 3  ;;  %s363_s10 = smov 101  }
  0x11   :  { %v57_v9 = vld [vmem:[#allocation0] sm:$0x3]  }
  0x12   :  { %34 = vrot.lane.b32.xlu0 %v33_v5, %s341_s11  ;;  %v63_v10 = vld [vmem:[#allocation0] sm:$0x3]   ;;  %s364_s11 = smov 100  }
  0x13   :  { %40 = vrot.lane.b32.xlu1 %v39_v6, %s342_s12  ;;  %v69_v11 = vld [vmem:[#allocation0] sm:$0x3]   ;;  %s204_s12 = smov 3 }
  0x14   :  { %v75_v12 = vld [vmem:[#allocation0] sm:$0x3]  }
  0x15   :  { %v81_v13 = vld [vmem:[#allocation0] sm:$0x3]  }
  0x16   :  { %46 = vrot.lane.b32.xlu0 %v45_v7, %s343_s13  ;;  %v87_v14 = vld [vmem:[#allocation0] sm:$0x3]   ;;  %s365_s13 = smov 99  }
  0x17   :  { %52 = vrot.lane.b32.xlu1 %v51_v8, %s344_s14  ;;  %v93_v15 = vld [vmem:[#allocation0] sm:$0x3]   ;;  %s366_s14 = smov 98  }
  0x18   :  { %v99_v16 = vld [vmem:[#allocation0] sm:$0x3]  }
  0x19   :  { %v105_v17 = vld [vmem:[#allocation0] sm:$0x3]  }
  0x1a   :  { %58 = vrot.lane.b32.xlu0 %v57_v9, %s345_s15  ;;  %v111_v18 = vld [vmem:[#allocation0] sm:$0x3]   ;;  %s367_s15 = smov 97  }
  0x1b   :  { %64 = vrot.lane.b32.xlu1 %v63_v10, %s346_s16  ;;  %v117_v19 = vld [vmem:[#allocation0] sm:$0x3]   ;;  %s368_s16 = smov 96  }
  0x1c   :  { %v123_v20 = vld [vmem:[#allocation0] sm:$0x3]  }
  0x1d   :  { %v129_v21 = vld [vmem:[#allocation0] sm:$0x3]  }
  0x1e   :  { %70 = vrot.lane.b32.xlu0 %v69_v11, %s347_s17  ;;  %v135_v22 = vld [vmem:[#allocation0] sm:$0x3]  }
  0x1f   :  { %76 = vrot.lane.b32.xlu1 %v75_v12, %s348_s18  ;;  %v141_v23 = vld [vmem:[#allocation0] sm:$0x3]  }
  0x20   :  { %v149_v24 = vld [vmem:[#allocation0 + $0x1] ss:$-1 sm:%s148_s27]  }
  0x21   :  { %v157_v25 = vld [vmem:[#allocation0 + $0x1] ss:$-1 sm:%s156_s30]  }
  0x22   :  { %82 = vrot.lane.b32.xlu0 %v81_v13, %s349_s19  ;;  %v165_v26 = vld [vmem:[#allocation0 + $0x1] ss:$-1 sm:%s164_s2]   ;;  %s369_s19 = smov 95  }
  0x23   :  { %88 = vrot.lane.b32.xlu1 %v87_v14, %s350_s20  ;;  %v173_v27 = vld [vmem:[#allocation0 + $0x1] ss:$-1 sm:%s172_s5]   ;;  %s370_s20 = smov 94  }
  0x24   :  { %v181_v28 = vld [vmem:[#allocation0 + $0x1] ss:$-1 sm:%s180_s6]  }
  0x25   :  { %v189_v29 = vld [vmem:[#allocation0 + $0x1] ss:$-1 sm:%s188_s8]  }
  0x26   :  { %94 = vrot.lane.b32.xlu0 %v93_v15, %s351_s21  ;;  %v197_v30 = vld [vmem:[#allocation0 + $0x1] ss:$-1 sm:%s196_s9]   ;;  %s371_s21 = smov 93  }
  0x27   :  { %100 = vrot.lane.b32.xlu1 %v99_v16, %s352_s22  ;;  %v205_v31 = vld [vmem:[#allocation0 + $0x1] ss:$-1 sm:%s204_s12]   ;;  %s372_s22 = smov 92  }
  0x28   :  { %v211_v32 = vld [vmem:[#allocation0] sm:$0x3]  }
  0x29   :  { %v217_v33 = vld [vmem:[#allocation0] sm:$0x3]  }
  0x2a   :  { %106 = vrot.lane.b32.xlu0 %v105_v17, %s353_s23  ;;  %v223_v34 = vld [vmem:[#allocation0] sm:$0x3]   ;;  %s373_s23 = smov 91  }
  0x2b   :  { %112 = vrot.lane.b32.xlu1 %v111_v18, %s354_s24  ;;  %v6_v35 = vld [vmem:[#allocation0] sm:$0x3]   ;;  %s374_s24 = smov 90  }
  0x2c   :  { %8 = vst.msk [vmem:[%s550_s1] ss:$40 sm:$0x3] %vm7_vm0, %v6_v35   ;;  %v229_v36 = vld [vmem:[#allocation0] sm:$0x3]  }
  0x2d   :  { %v235_v37 = vld [vmem:[#allocation0] sm:$0x3]  }
  0x2e   :  { %118 = vrot.lane.b32.xlu0 %v117_v19, %s355_s25  ;;  %v241_v38 = vld [vmem:[#allocation0] sm:$0x3]   ;;  %s375_s25 = smov 89  }
  0x2f   :  { %124 = vrot.lane.b32.xlu1 %v123_v20, %s356_s26  ;;  %v247_v39 = vld [vmem:[#allocation0] sm:$0x3]  }
  0x30   :  { %v253_v40 = vld [vmem:[#allocation0] sm:$0x3]  }
  0x32   :  { %130 = vrot.lane.b32.xlu0 %v129_v21, %s357_s28 }
  0x33   :  { %136 = vrot.lane.b32.xlu1 %v135_v22, %s358_s29 }
  0x36   :  { %142 = vrot.lane.b32.xlu0 %v141_v23, %s359_s3 }
  0x37   :  { %150 = vrot.lane.b32.xlu1 %v149_v24, %s360_s4 }
  0x3a   :  { %158 = vrot.lane.b32.xlu0 %v157_v25, %s361_s7 }
  0x3b   :  { %166 = vrot.lane.b32.xlu1 %v165_v26, %s362_s0 }
  0x3e   :  { %174 = vrot.lane.b32.xlu0 %v173_v27, %s363_s10 }
  0x3f   :  { %182 = vrot.lane.b32.xlu1 %v181_v28, %s364_s11 }
  0x42   :  { %190 = vrot.lane.b32.xlu0 %v189_v29, %s365_s13 }
  0x43   :  { %198 = vrot.lane.b32.xlu1 %v197_v30, %s366_s14 }
  0x46   :  { %206 = vrot.lane.b32.xlu0 %v205_v31, %s367_s15 }
  0x47   :  { %212 = vrot.lane.b32.xlu1 %v211_v32, %s368_s16 }
  0x4a   :  { %218 = vrot.lane.b32.xlu0 %v217_v33, %s369_s19 }
  0x4b   :  { %224 = vrot.lane.b32.xlu1 %v223_v34, %s370_s20 }
  0x4e   :  { %230 = vrot.lane.b32.xlu0 %v229_v36, %s371_s21 }
  0x4f   :  { %236 = vrot.lane.b32.xlu1 %v235_v37, %s372_s22 }
  0x52   :  { %242 = vrot.lane.b32.xlu0 %v241_v38, %s373_s23 }
  0x53   :  { %248 = vrot.lane.b32.xlu1 %v247_v39, %s374_s24 }
  0x56   :  { %254 = vrot.lane.b32.xlu0 %v253_v40, %s375_s25 }
  0x7c   :  { %v11_v41 = vpop.permute.xlu0 %10  }
  0x7d   :  { %v23_v42 = vpop.permute.xlu1 %22   ;;  %259 = vst.msk [vmem:[%s550_s1 + $0x1] ss:$40 sm:$0x3] %vm7_vm0, %v11_v41  }
  0x7e   :  { %261 = vst.msk [vmem:[%s550_s1 + $0x3] ss:$40 sm:$0x3] %vm7_vm0, %v23_v42  }
  0x80   :  { %v17_v43 = vpop.permute.xlu0 %16  }
  0x81   :  { %v29_v44 = vpop.permute.xlu1 %28   ;;  %260 = vst.msk [vmem:[%s550_s1 + $0x2] ss:$40 sm:$0x3] %vm7_vm0, %v17_v43  }
  0x82   :  { %262 = vst.msk [vmem:[%s550_s1 + $0x4] ss:$40 sm:$0x3] %vm7_vm0, %v29_v44  }
  0x84   :  { %v35_v45 = vpop.permute.xlu0 %34  }
  0x85   :  { %v41_v46 = vpop.permute.xlu1 %40   ;;  %263 = vst.msk [vmem:[%s550_s1 + $0x5] ss:$40 sm:$0x3] %vm7_vm0, %v35_v45  }
  0x86   :  { %264 = vst.msk [vmem:[%s550_s1 + $0x6] ss:$40 sm:$0x3] %vm7_vm0, %v41_v46  }
  0x88   :  { %v47_v47 = vpop.permute.xlu0 %46  }
  0x89   :  { %v53_v48 = vpop.permute.xlu1 %52   ;;  %265 = vst.msk [vmem:[%s550_s1 + $0x7] ss:$40 sm:$0x3] %vm7_vm0, %v47_v47  }
  0x8a   :  { %266 = vst.msk [vmem:[%s550_s1 + $0x8] ss:$40 sm:$0x3] %vm7_vm0, %v53_v48  }
  0x8c   :  { %v59_v49 = vpop.permute.xlu0 %58  }
  0x8d   :  { %v65_v50 = vpop.permute.xlu1 %64   ;;  %267 = vst.msk [vmem:[%s550_s1 + $0x9] ss:$40 sm:$0x3] %vm7_vm0, %v59_v49  }
  0x8e   :  { %268 = vst.msk [vmem:[%s550_s1 + $0xa] ss:$40 sm:$0x3] %vm7_vm0, %v65_v50  }
  0x90   :  { %v71_v51 = vpop.permute.xlu0 %70  }
  0x91   :  { %v77_v52 = vpop.permute.xlu1 %76   ;;  %269 = vst.msk [vmem:[%s550_s1 + $0xb] ss:$40 sm:$0x3] %vm7_vm0, %v71_v51  }
  0x92   :  { %270 = vst.msk [vmem:[%s550_s1 + $0xc] ss:$40 sm:$0x3] %vm7_vm0, %v77_v52  }
  0x94   :  { %v83_v53 = vpop.permute.xlu0 %82  }
  0x95   :  { %v89_v54 = vpop.permute.xlu1 %88   ;;  %271 = vst.msk [vmem:[%s550_s1 + $0xd] ss:$40 sm:$0x3] %vm7_vm0, %v83_v53  }
  0x96   :  { %272 = vst.msk [vmem:[%s550_s1 + $0xe] ss:$40 sm:$0x3] %vm7_vm0, %v89_v54  }
  0x98   :  { %v95_v55 = vpop.permute.xlu0 %94  }
  0x99   :  { %v101_v56 = vpop.permute.xlu1 %100   ;;  %273 = vst.msk [vmem:[%s550_s1 + $0xf] ss:$40 sm:$0x3] %vm7_vm0, %v95_v55  }
  0x9a   :  { %274 = vst.msk [vmem:[%s550_s1 + $0x10] ss:$40 sm:$0x3] %vm7_vm0, %v101_v56  }
  0x9c   :  { %v107_v57 = vpop.permute.xlu0 %106  }
  0x9d   :  { %v113_v58 = vpop.permute.xlu1 %112   ;;  %275 = vst.msk [vmem:[%s550_s1 + $0x11] ss:$40 sm:$0x3] %vm7_vm0, %v107_v57  }
  0x9e   :  { %276 = vst.msk [vmem:[%s550_s1 + $0x12] ss:$40 sm:$0x3] %vm7_vm0, %v113_v58  }
  0xa0   :  { %v119_v59 = vpop.permute.xlu0 %118  }
  0xa1   :  { %v125_v60 = vpop.permute.xlu1 %124   ;;  %277 = vst.msk [vmem:[%s550_s1 + $0x13] ss:$40 sm:$0x3] %vm7_vm0, %v119_v59  }
  0xa2   :  { %278 = vst.msk [vmem:[%s550_s1 + $0x14] ss:$40 sm:$0x3] %vm7_vm0, %v125_v60  }
  0xa4   :  { %v131_v61 = vpop.permute.xlu0 %130  }
  0xa5   :  { %v137_v62 = vpop.permute.xlu1 %136   ;;  %279 = vst.msk [vmem:[%s550_s1 + $0x15] ss:$40 sm:$0x3] %vm7_vm0, %v131_v61  }
  0xa6   :  { %280 = vst.msk [vmem:[%s550_s1 + $0x16] ss:$40 sm:$0x3] %vm7_vm0, %v137_v62  }
  0xa8   :  { %v143_v63 = vpop.permute.xlu0 %142  }
  0xa9   :  { %v151_v0 = vpop.permute.xlu1 %150   ;;  %281 = vst.msk [vmem:[%s550_s1 + $0x17] ss:$40 sm:$0x3] %vm7_vm0, %v143_v63  }
  0xaa   :  { %282 = vst.msk [vmem:[%s550_s1 + $0x40] ss:$-40 sm:$0x3] %vm7_vm0, %v151_v0  }
  0xac   :  { %v159_v1 = vpop.permute.xlu0 %158  }
  0xad   :  { %v167_v2 = vpop.permute.xlu1 %166   ;;  %283 = vst.msk [vmem:[%s550_s1 + $0x41] ss:$-40 sm:$0x3] %vm7_vm0, %v159_v1  }
  0xae   :  { %284 = vst.msk [vmem:[%s550_s1 + $0x42] ss:$-40 sm:$0x3] %vm7_vm0, %v167_v2  }
  0xb0   :  { %v175_v3 = vpop.permute.xlu0 %174  }
  0xb1   :  { %v183_v4 = vpop.permute.xlu1 %182   ;;  %285 = vst.msk [vmem:[%s550_s1 + $0x43] ss:$-40 sm:$0x3] %vm7_vm0, %v175_v3  }
  0xb2   :  { %286 = vst.msk [vmem:[%s550_s1 + $0x44] ss:$-40 sm:$0x3] %vm7_vm0, %v183_v4  }
  0xb4   :  { %v191_v5 = vpop.permute.xlu0 %190  }
  0xb5   :  { %v199_v6 = vpop.permute.xlu1 %198   ;;  %287 = vst.msk [vmem:[%s550_s1 + $0x45] ss:$-40 sm:$0x3] %vm7_vm0, %v191_v5  }
  0xb6   :  { %288 = vst.msk [vmem:[%s550_s1 + $0x46] ss:$-40 sm:$0x3] %vm7_vm0, %v199_v6  }
  0xb8   :  { %v207_v7 = vpop.permute.xlu0 %206  }
  0xb9   :  { %v213_v8 = vpop.permute.xlu1 %212   ;;  %289 = vst.msk [vmem:[%s550_s1 + $0x47] ss:$-40 sm:$0x3] %vm7_vm0, %v207_v7  }
  0xba   :  { %290 = vst.msk [vmem:[%s550_s1 + $0x20] ss:$40 sm:$0x3] %vm7_vm0, %v213_v8  }
  0xbc   :  { %v219_v9 = vpop.permute.xlu0 %218  }
  0xbd   :  { %v225_v10 = vpop.permute.xlu1 %224   ;;  %291 = vst.msk [vmem:[%s550_s1 + $0x21] ss:$40 sm:$0x3] %vm7_vm0, %v219_v9  }
  0xbe   :  { %292 = vst.msk [vmem:[%s550_s1 + $0x22] ss:$40 sm:$0x3] %vm7_vm0, %v225_v10  }
  0xc0   :  { %v231_v11 = vpop.permute.xlu0 %230  }
  0xc1   :  { %v237_v12 = vpop.permute.xlu1 %236   ;;  %293 = vst.msk [vmem:[%s550_s1 + $0x23] ss:$40 sm:$0x3] %vm7_vm0, %v231_v11  }
  0xc2   :  { %294 = vst.msk [vmem:[%s550_s1 + $0x24] ss:$40 sm:$0x3] %vm7_vm0, %v237_v12  }
  0xc4   :  { %v243_v13 = vpop.permute.xlu0 %242  }
  0xc5   :  { %v249_v14 = vpop.permute.xlu1 %248   ;;  %295 = vst.msk [vmem:[%s550_s1 + $0x25] ss:$40 sm:$0x3] %vm7_vm0, %v243_v13  }
  0xc6   :  { %296 = vst.msk [vmem:[%s550_s1 + $0x26] ss:$40 sm:$0x3] %vm7_vm0, %v249_v14  }
  0xc8   :  { %v255_v15 = vpop.permute.xlu0 %254  }
  0xc9   :  { %297 = vst.msk [vmem:[%s550_s1 + $0x27] ss:$40 sm:$0x3] %vm7_vm0, %v255_v15  }

// kernel: forward.1
= control target key start
LH: loop header
LB: loop body
LE: loop exit
PB: predicated region body
PF: predicated region fallthrough
CT: control target
= control target key end

     0   :  { %s2532_s21 = smov 0   ;;  %s3714_s0 = inlined_call_operand.vmem [shape: bf16[2,24,512], index: 0, kind: input, shape index: {}]   ;;  %s3715_s1 = inlined_call_operand.vmem [shape: bf16[40,600], index: 1, kind: input, shape index: {}]   ;;  %s3716_s2 = inlined_call_operand.vmem [shape: f32[40,1], index: 2, kind: input, shape index: {}]   ;;  %s3717_s3 = inlined_call_operand.vmem [shape: bf16[40,40], index: 3, kind: input, shape index: {}]   ;;  %s3718_s4 = inlined_call_operand.vmem [shape: bf16[165,7], index: 4, kind: input, shape index: {}]   ;;  %s3719_s5 = inlined_call_operand.vmem [shape: f32[80,1], index: 5, kind: input, shape index: {}]   ;;  %s3720_s6 = inlined_call_operand.vmem [shape: f32[2,80,7], index: 6, kind: output, shape index: {}]  }
   0x1 LB: > { %s2191_s22 = sadd.s32 4294967295, %s2477_s21   ;;  %p2195_p0 = scmp.ge.s32.totalorder %s2477_s21, 1  ;;  %s2477_s21 = sphi %s2532_s21, %s16_s21  }
   0x2   : > { %p212_p1 = scmp.lt.s32.totalorder %s2477_s21, 3 }
   0x4   : > { %p213_p2 = pnand %p2195_p0, %p212_p1 }
   0x6   : > { %216 = sbr.rel (%p213_p2) target bundleno = 1260 (0x4ec), region = 44 }
   0xd   : > { %p242_p3 = scmp.lt.s32.totalorder %s2191_s22, 1  ;;  %s2479_s27 = smov 123   ;;  %vm421_vm0 = vcmask 1006592   ;;  %vm448_vm1 = vcmask 998400   ;;  %vm475_vm2 = vcmask 990208   ;;  %vm502_vm3 = vcmask 982016  }
   0xe   : > { %s2480_s28 = smov 122   ;;  %s2481_s29 = smov 121   ;;  %vm702_vm4 = vcmask 1043456   ;;  %vm313_vm5 = vcmask 1039360   ;;  %vm340_vm6 = vcmask 1031168   ;;  %vm959_vm7 = vcmask 916480  }
   0xf   : > { %s3788_s22 = smov (!%p242_p3, %s2191_s22), 1  ;;  %s2482_s30 = smov 120   ;;  %vm367_vm8 = vcmask 1022976   ;;  %vm1166_vm9 = vcmask 719872   ;;  %vm394_vm10 = vcmask 1014784   ;;  %vm529_vm11 = vcmask 973824  }
  0x10   : > { %s2352_s23 = smul.u32 48, %s3788_s22  ;;  %s2483_s7 = smov 127   ;;  %vm556_vm12 = vcmask 965632   ;;  %vm583_vm13 = vcmask 957440   ;;  %vm610_vm14 = vcmask 949248   ;;  %vm637_vm15 = vcmask 941056  }
  0x11   : > { %s2484_s8 = smov 126   ;;  %s2485_s9 = smov 125  }
  0x12   : > { %s246_s26 = scalar_lea.vmem %s3714_s0, %s2352_s23  ;;  %s2486_s10 = smov 112  }
  0x13   : > { %v256_v0 = vld [vmem:[%s246_s26 + $0x18] sm:$0xff]  ;;  %v258_v1 = vld [vmem:[%s246_s26 + $0x28] sm:$0xff]  ;;  %v255_v3 = vld [vmem:[%s246_s26 + $0x10] sm:$0xff]  ;;  %s2488_s11 = smov 124   ;;  %s2489_s12 = smov 119  }
  0x14   : > { %v2546_v2 = vcombine.high %v256_v0, %v258_v1  ;;  %v257_v4 = vld [vmem:[%s246_s26 + $0x20] sm:$0xff]  ;;  %v254_v6 = vld [vmem:[%s246_s26 + $0x8] sm:$0xff]  ;;  %v2560_v11 = vcombine.low %v256_v0, %v258_v1  ;;  %v2575_v14 = vcombine.low %v258_v1, %v258_v1  ;;  %v2584_v17 = vcombine.high %v258_v1, %v258_v1  ;;  %s2490_s13 = smov 118   ;;  %s2491_s14 = smov 117  }
  0x15   : > { %v253_v5 = vld [vmem:[%s246_s26] sm:$0xff]  ;;  %v2548_v7 = vcombine.high %v255_v3, %v257_v4  ;;  %v2554_v9 = vcombine.low %v255_v3, %v257_v4  ;;  %v2564_v12 = vcombine.low %v254_v6, %v256_v0  ;;  %v2571_v13 = vcombine.high %v254_v6, %v256_v0  ;;  %s2492_s17 = smov 116   ;;  %s2493_s18 = smov 115  }
  0x16   : > { %419 = vrot.lane.b32.xlu1 %v2546_v2, %s2479_s27  ;;  %v2552_v8 = vcombine.high %v253_v5, %v255_v3  ;;  %v2558_v10 = vcombine.low %v253_v5, %v255_v3  ;;  %v2578_v15 = vcombine.high %v257_v4, %v257_v4  ;;  %v2581_v16 = vcombine.high %v253_v5, %v253_v5  ;;  %s2494_s19 = smov 114   ;;  %s2495_s20 = smov 113  }
  0x17   : > { %415 = vrot.lane.b32.xlu0 %v2548_v7, %s2479_s27  ;;  %v2587_v18 = vcombine.high %v254_v6, %v254_v6  ;;  %v2590_v19 = vcombine.low %v254_v6, %v254_v6  ;;  %v2593_v20 = vcombine.low %v253_v5, %v253_v5  ;;  %v2596_v21 = vcombine.low %v257_v4, %v257_v4 }
  0x18   : > { %1188 = vmatprep.subr.bf16.mxu0 %v2552_v8 }
  0x19   : > { %1189 = vmatpush1.bf16.msra.mxu0 %v2558_v10 }
  0x1a   : > { %413 = vrot.lane.b32.xlu1 %v2554_v9, %s2479_s27 }
  0x1b   : > { %417 = vrot.lane.b32.xlu0 %v2560_v11, %s2479_s27 }
  0x1e   : > { %436 = vrot.lane.b32.xlu1 %v2564_v12, %s2480_s28 }
  0x1f   : > { %434 = vrot.lane.b32.xlu0 %v2552_v8, %s2480_s28 }
  0x22   : > { %432 = vrot.lane.b32.xlu1 %v2558_v10, %s2480_s28 }
  0x23   : > { %438 = vrot.lane.b32.xlu0 %v2571_v13, %s2480_s28 }
  0x26   : > { %444 = vrot.lane.b32.xlu1 %v2575_v14, %s2480_s28 }
  0x27   : > { %442 = vrot.lane.b32.xlu0 %v2578_v15, %s2480_s28 }
  0x2a   : > { %461 = vrot.lane.b32.xlu1 %v2581_v16, %s2481_s29 }
  0x2b   : > { %446 = vrot.lane.b32.xlu0 %v2584_v17, %s2480_s28 }
  0x2e   : > { %465 = vrot.lane.b32.xlu1 %v2587_v18, %s2481_s29 }
  0x2f   : > { %463 = vrot.lane.b32.xlu0 %v2590_v19, %s2481_s29 }
  0x32   : > { %459 = vrot.lane.b32.xlu1 %v2593_v20, %s2481_s29 }
  0x33   : > { %440 = vrot.lane.b32.xlu0 %v2596_v21, %s2480_s28 }
  0x36   : > { %471 = vrot.lane.b32.xlu1 %v2560_v11, %s2481_s29 }
  0x37   : > { %469 = vrot.lane.b32.xlu0 %v2548_v7, %s2481_s29 }
  0x3a   : > { %467 = vrot.lane.b32.xlu1 %v2554_v9, %s2481_s29 }
  0x3b   : > { %473 = vrot.lane.b32.xlu0 %v2546_v2, %s2481_s29 }
  0x3e   : > { %490 = vrot.lane.b32.xlu1 %v2564_v12, %s2482_s30 }
  0x3f   : > { %488 = vrot.lane.b32.xlu0 %v2552_v8, %s2482_s30 }
  0x42   : > { %486 = vrot.lane.b32.xlu1 %v2558_v10, %s2482_s30 }
  0x43   : > { %492 = vrot.lane.b32.xlu0 %v2571_v13, %s2482_s30 }
  0x46   : > { %496 = vrot.lane.b32.xlu1 %v2578_v15, %s2482_s30 }
  0x47   : > { %494 = vrot.lane.b32.xlu0 %v2596_v21, %s2482_s30 }
  0x4a   : > { %500 = vrot.lane.b32.xlu1 %v2584_v17, %s2482_s30 }
  0x4b   : > { %498 = vrot.lane.b32.xlu0 %v2575_v14, %s2482_s30 }
  0x4e   : > { %303 = vrot.lane.b32.xlu1 %v2587_v18, %s2483_s7 }
  0x4f   : > { %301 = vrot.lane.b32.xlu0 %v2590_v19, %s2483_s7 }
  0x52   : > { %311 = vrot.lane.b32.xlu1 %v2546_v2, %s2483_s7 }
  0x53   : > { %309 = vrot.lane.b32.xlu0 %v2560_v11, %s2483_s7 }
  0x56   : > { %297 = vrot.lane.b32.xlu1 %v2593_v20, %s2483_s7 }
  0x57   : > { %299 = vrot.lane.b32.xlu0 %v2581_v16, %s2483_s7 }
  0x5a   : > { %330 = vrot.lane.b32.xlu1 %v2571_v13, %s2484_s8 }
  0x5b   : > { %328 = vrot.lane.b32.xlu0 %v2564_v12, %s2484_s8 }
  0x5e   : > { %338 = vrot.lane.b32.xlu1 %v2584_v17, %s2484_s8 }
  0x5f   : > { %336 = vrot.lane.b32.xlu0 %v2575_v14, %s2484_s8 }
  0x62   : > { %357 = vrot.lane.b32.xlu1 %v2587_v18, %s2485_s9 }
  0x63   : > { %355 = vrot.lane.b32.xlu0 %v2590_v19, %s2485_s9 }
  0x66   : > { %305 = vrot.lane.b32.xlu1 %v2554_v9, %s2483_s7 }
  0x67   : > { %307 = vrot.lane.b32.xlu0 %v2548_v7, %s2483_s7 }
  0x6a   : > { %363 = vrot.lane.b32.xlu1 %v2560_v11, %s2485_s9 }
  0x6b   : > { %326 = vrot.lane.b32.xlu0 %v2552_v8, %s2484_s8 }
  0x6e   : > { %324 = vrot.lane.b32.xlu1 %v2558_v10, %s2484_s8 }
  0x6f   : > { %365 = vrot.lane.b32.xlu0 %v2546_v2, %s2485_s9 }
  0x88   : > { %v2640_v22 = vpop.permute.xlu1 %419 }
  0x89   : > { %v416_v23 = vpop.permute.xlu0 %415 }
  0x8c   : > { %v414_v24 = vpop.permute.xlu1 %413 }
  0x8d   : > { %v418_v25 = vpop.permute.xlu0 %417  ;;  %v2654_v30 = vsel %vm421_vm0, %v414_v24, %v416_v23 }
  0x8e   : > { %v2643_v26 = vsel %vm421_vm0, %v416_v23, %v418_v25  ;;  %v2647_v27 = vsel %vm421_vm0, %v418_v25, %v2640_v22 }
  0x8f   : > { %913 = vrot.lane.b32.xlu0 %v2643_v26, %s2486_s10  ;;  %915 = vrot.lane.b32.xlu1 %v2647_v27, %s2486_s10 }
  0x90   : > { %v437_v28 = vpop.permute.xlu1 %436 }
  0x91   : > { %v435_v29 = vpop.permute.xlu0 %434 }
  0x92   : > { %v2657_v31 = vsel %vm448_vm1, %v435_v29, %v437_v28 }
  0x93   : > { %911 = vrot.lane.b32.xlu0 %v2654_v30, %s2486_s10  ;;  %921 = vrot.lane.b32.xlu1 %v2657_v31, %s2486_s10 }
  0x94   : > { %v433_v32 = vpop.permute.xlu1 %432 }
  0x95   : > { %v2663_v33 = vpop.permute.xlu0 %438  ;;  %v2666_v34 = vsel %vm448_vm1, %v433_v32, %v435_v29 }
  0x96   : > { %v2670_v35 = vsel %vm448_vm1, %v437_v28, %v2663_v33 }
  0x97   : > { %923 = vrot.lane.b32.xlu0 %v2670_v35, %s2486_s10  ;;  %919 = vrot.lane.b32.xlu1 %v2666_v34, %s2486_s10 }
  0x98   : > { %v445_v36 = vpop.permute.xlu1 %444 }
  0x99   : > { %v443_v37 = vpop.permute.xlu0 %442 }
  0x9a   : > { %v453_v5 = vsel %vm448_vm1, %v443_v37, %v445_v36 }
  0x9c   : > { %v462_v38 = vpop.permute.xlu1 %461 }
  0x9d   : > { %v2676_v39 = vpop.permute.xlu0 %446 }
  0x9e   : > { %3746 = vst [vmem:[#allocation2_spill] sm:$0xff] %v2676_v39  ;;  %v454_v6 = vsel %vm448_vm1, %v445_v36, %v2676_v39 }
  0xa0   : > { %v2678_v40 = vpop.permute.xlu1 %465 }
  0xa1   : > { %v464_v41 = vpop.permute.xlu0 %463 }
  0xa2   : > { %v477_v1 = vsel %vm475_vm2, %v462_v38, %v464_v41  ;;  %v478_v3 = vsel %vm475_vm2, %v464_v41, %v2678_v40 }
  0xa3   : > { %v2745_v24 = vsel %vm702_vm4, %v453_v5, %v477_v1  ;;  %v2748_v25 = vsel %vm702_vm4, %v454_v6, %v478_v3 }
  0xa4   : > { %v460_v42 = vpop.permute.xlu1 %459  ;;  %3757 = vst [vmem:[#allocation13_spill] sm:$0xff] %v2748_v25 }
  0xa5   : > { %v441_v43 = vpop.permute.xlu0 %440  ;;  %v476_v29 = vsel %vm475_vm2, %v460_v42, %v462_v38 }
  0xa6   : > { %v452_v28 = vsel %vm448_vm1, %v441_v43, %v443_v37  ;;  %vm691_vm1 = vcmask 924672  }
  0xa7   : > { %v2761_v41 = vsel %vm702_vm4, %v452_v28, %v476_v29 }
  0xa8   : > { %v472_v44 = vpop.permute.xlu1 %471 }
  0xa9   : > { %v470_v45 = vpop.permute.xlu0 %469 }
  0xaa   : > { %v2681_v46 = vsel %vm475_vm2, %v470_v45, %v472_v44 }
  0xab   : > { %937 = vrot.lane.b32.xlu1 %v2681_v46, %s2486_s10 }
  0xac   : > { %v468_v47 = vpop.permute.xlu1 %467 }
  0xad   : > { %v2685_v48 = vpop.permute.xlu0 %473  ;;  %v2688_v49 = vsel %vm475_vm2, %v468_v47, %v470_v45 }
  0xae   : > { %3747 = vst [vmem:[#allocation3_spill] sm:$0xff] %v2685_v48  ;;  %v2692_v50 = vsel %vm475_vm2, %v472_v44, %v2685_v48 }
  0xaf   : > { %3748 = vst [vmem:[#allocation4_spill] sm:$0xff] %v2692_v50  ;;  %939 = vrot.lane.b32.xlu0 %v2692_v50, %s2486_s10  ;;  %935 = vrot.lane.b32.xlu1 %v2688_v49, %s2486_s10 }
  0xb0   : > { %v491_v51 = vpop.permute.xlu1 %490 }
  0xb1   : > { %v489_v52 = vpop.permute.xlu0 %488 }
  0xb2   : > { %v2699_v53 = vsel %vm502_vm3, %v489_v52, %v491_v51 }
  0xb3   : > { %3749 = vst [vmem:[#allocation5_spill] sm:$0xff] %v2699_v53  ;;  %945 = vrot.lane.b32.xlu0 %v2699_v53, %s2486_s10 }
  0xb4   : > { %v487_v54 = vpop.permute.xlu1 %486 }
  0xb5   : > { %v2703_v55 = vpop.permute.xlu0 %492  ;;  %v2706_v56 = vsel %vm502_vm3, %v487_v54, %v489_v52 }
  0xb6   : > { %3750 = vst [vmem:[#allocation6_spill] sm:$0xff] %v2703_v55  ;;  %3751 = vst [vmem:[#allocation7_spill] sm:$0xff] %v2706_v56  ;;  %v2710_v57 = vsel %vm502_vm3, %v491_v51, %v2703_v55  ;;  %v3721_v51 = vmov 0  }
  0xb7   : > { %3752 = vst [vmem:[#allocation8_spill] sm:$0xff] %v2710_v57  ;;  %947 = vrot.lane.b32.xlu1 %v2710_v57, %s2486_s10  ;;  %943 = vrot.lane.b32.xlu0 %v2706_v56, %s2486_s10 }
  0xb8   : > { %v497_v58 = vpop.permute.xlu1 %496  ;;  %1342 = vmatprep.mubr.bf16.mxu1 %v3721_v51  ;;  %2381 = vset.pattern.permute.xlu1 %v3721_v51 }
  0xb9   : > { %v495_v59 = vpop.permute.xlu0 %494  ;;  %2380 = vset.pattern.permute.xlu0 %v3721_v51 }
  0xba   : > { %v2717_v60 = vsel %vm502_vm3, %v495_v59, %v497_v58 }
  0xbb   : > { %3753 = vst [vmem:[#allocation9_spill] sm:$0xff] %v2717_v60  ;;  %951 = vrot.lane.b32.xlu1 %v2717_v60, %s2486_s10 }
  0xbc   : > { %v2721_v61 = vpop.permute.xlu1 %500 }
  0xbd   : > { %3754 = vst [vmem:[#allocation10_spill] sm:$0xff] %v2721_v61  ;;  %v499_v62 = vpop.permute.xlu0 %498 }
  0xbe   : > { %v2724_v63 = vsel %vm502_vm3, %v497_v58, %v499_v62  ;;  %v2728_v0 = vsel %vm502_vm3, %v499_v62, %v2721_v61 }
  0xbf   : > { %3755 = vst [vmem:[#allocation11_spill] sm:$0xff] %v2724_v63  ;;  %3756 = vst [vmem:[#allocation12_spill] sm:$0xff] %v2728_v0  ;;  %953 = vrot.lane.b32.xlu0 %v2724_v63, %s2486_s10  ;;  %955 = vrot.lane.b32.xlu1 %v2728_v0, %s2486_s10 }
  0xc0   : > { %v2737_v4 = vpop.permute.xlu1 %303 }
  0xc1   : > { %v2742_v23 = vpop.permute.xlu0 %301 }
  0xc3   : > { %929 = vrot.lane.b32.xlu0 %v2745_v24, %s2486_s10  ;;  %931 = vrot.lane.b32.xlu1 %v2748_v25, %s2486_s10 }
  0xc4   : > { %v2756_v32 = vpop.permute.xlu1 %311 }
  0xc5   : > { %v2758_v36 = vpop.permute.xlu0 %309 }
  0xc7   : > { %927 = vrot.lane.b32.xlu0 %v2761_v41, %s2486_s10  ;;  %353 = vrot.lane.b32.xlu1 %v2581_v16, %s2485_s9 }
  0xc8   : > { %v298_v37 = vpop.permute.xlu1 %297 }
  0xc9   : > { %v300_v38 = vpop.permute.xlu0 %299 }
  0xca   : > { %v315_v42 = vsel %vm313_vm5, %v300_v38, %v2742_v23  ;;  %v314_v43 = vsel %vm313_vm5, %v298_v37, %v300_v38 }
  0xcb   : > { %334 = vrot.lane.b32.xlu0 %v2578_v15, %s2484_s8  ;;  %351 = vrot.lane.b32.xlu1 %v2593_v20, %s2485_s9  ;;  %v2776_v44 = vsel %vm702_vm4, %v2578_v15, %v315_v42  ;;  %v2780_v45 = vsel %vm702_vm4, %v2596_v21, %v314_v43 }
  0xcc   : > { %v2782_v47 = vpop.permute.xlu1 %330  ;;  %1190 = vmatprep.subr.bf16.mxu0 %v2776_v44 }
  0xcd   : > { %v2786_v52 = vpop.permute.xlu0 %328  ;;  %1191 = vmatpush1.bf16.msra.mxu0 %v2780_v45 }
  0xcf   : > { %332 = vrot.lane.b32.xlu0 %v2596_v21, %s2484_s8  ;;  %384 = vrot.lane.b32.xlu1 %v2571_v13, %s2488_s11 }
  0xd0   : > { %v2795_v54 = vpop.permute.xlu1 %338 }
  0xd1   : > { %v2797_v58 = vpop.permute.xlu0 %336 }
  0xd3   : > { %382 = vrot.lane.b32.xlu0 %v2564_v12, %s2488_s11  ;;  %392 = vrot.lane.b32.xlu1 %v2584_v17, %s2488_s11 }
  0xd4   : > { %v2803_v59 = vpop.permute.xlu1 %357 }
  0xd5   : > { %v2805_v62 = vpop.permute.xlu0 %355 }
  0xd7   : > { %390 = vrot.lane.b32.xlu0 %v2575_v14, %s2488_s11  ;;  %411 = vrot.lane.b32.xlu1 %v2587_v18, %s2479_s27 }
  0xd8   : > { %v306_v1 = vpop.permute.xlu1 %305 }
  0xd9   : > { %v308_v3 = vpop.permute.xlu0 %307 }
  0xda   : > { %v2813_v5 = vsel %vm313_vm5, %v308_v3, %v2758_v36  ;;  %v2816_v6 = vsel %vm313_vm5, %v306_v1, %v308_v3 }
  0xdb   : > { %3758 = vst [vmem:[#allocation14_spill] sm:$0xff] %v2813_v5  ;;  %3759 = vst [vmem:[#allocation15_spill] sm:$0xff] %v2816_v6  ;;  %409 = vrot.lane.b32.xlu0 %v2590_v19, %s2479_s27  ;;  %359 = vrot.lane.b32.xlu1 %v2554_v9, %s2485_s9 }
  0xdc   : > { %v2822_v28 = vpop.permute.xlu1 %363  ;;  %1192 = vmatprep.subr.bf16.mxu0 %v2813_v5 }
  0xdd   : > { %v327_v29 = vpop.permute.xlu0 %326  ;;  %1193 = vmatpush1.bf16.msra.mxu0 %v2816_v6 }
  0xde   : > { %v2828_v37 = vsel %vm340_vm6, %v327_v29, %v2786_v52 }
  0xdf   : > { %3760 = vst [vmem:[#allocation16_spill] sm:$0xff] %v2828_v37  ;;  %361 = vrot.lane.b32.xlu0 %v2548_v7, %s2485_s9  ;;  %378 = vrot.lane.b32.xlu1 %v2558_v10, %s2488_s11 }
  0xe0   : > { %v325_v38 = vpop.permute.xlu1 %324  ;;  %1194 = vmatprep.subr.bf16.mxu0 %v2828_v37 }
  0xe1   : > { %v2836_v42 = vsel %vm340_vm6, %v325_v38, %v327_v29  ;;  %v2861_v43 = vpop.permute.xlu0 %365 }
  0xe2   : > { %3761 = vst [vmem:[#allocation17_spill] sm:$0xff] %v2836_v42  ;;  %1195 = vmatpush1.bf16.msra.mxu0 %v2836_v42 }
  0xe3   : > { %380 = vrot.lane.b32.xlu0 %v2552_v8, %s2488_s11  ;;  %407 = vrot.lane.b32.xlu1 %v2581_v16, %s2479_s27 }
  0xe7   : > { %388 = vrot.lane.b32.xlu0 %v2578_v15, %s2488_s11  ;;  %405 = vrot.lane.b32.xlu1 %v2593_v20, %s2479_s27 }
  0xeb   : > { %386 = vrot.lane.b32.xlu0 %v2596_v21, %s2488_s11  ;;  %519 = vrot.lane.b32.xlu1 %v2587_v18, %s2489_s12 }
  0xef   : > { %517 = vrot.lane.b32.xlu0 %v2590_v19, %s2489_s12  ;;  %527 = vrot.lane.b32.xlu1 %v2546_v2, %s2489_s12 }
  0xf3   : > { %525 = vrot.lane.b32.xlu0 %v2560_v11, %s2489_s12  ;;  %513 = vrot.lane.b32.xlu1 %v2593_v20, %s2489_s12 }
  0xf7   : > { %515 = vrot.lane.b32.xlu0 %v2581_v16, %s2489_s12  ;;  %546 = vrot.lane.b32.xlu1 %v2571_v13, %s2490_s13 }
  0xfb   : > { %544 = vrot.lane.b32.xlu0 %v2564_v12, %s2490_s13  ;;  %554 = vrot.lane.b32.xlu1 %v2584_v17, %s2490_s13 }
  0xff   : > { %552 = vrot.lane.b32.xlu0 %v2575_v14, %s2490_s13  ;;  %573 = vrot.lane.b32.xlu1 %v2587_v18, %s2491_s14 }
 0x101   : > { %v914_v1 = vpop.permute.xlu0 %913  ;;  %v2867_v3 = vpop.permute.xlu1 %915 }
 0x102   : > { %3762 = vst [vmem:[#allocation18_spill] sm:$0xff] %v2867_v3  ;;  %v985_v29 = vsel %vm959_vm7, %v914_v1, %v2867_v3 }
 0x103   : > { %571 = vrot.lane.b32.xlu0 %v2590_v19, %s2491_s14  ;;  %521 = vrot.lane.b32.xlu1 %v2554_v9, %s2489_s12 }
 0x104   : > { %1310 = vmatprep.subr.bf16.mxu1 %v985_v29  ;;  %v2886_v29 = vld [vmem:[%s3715_s1 + $0x4] ss:$20 sps:$4 sm:$0xff]  }
 0x105   : > { %v912_v38 = vpop.permute.xlu0 %911  ;;  %v922_v51 = vpop.permute.xlu1 %921  ;;  %1220 = vmatprep.mubr.bf16.mxu0 %v2886_v29 }
 0x106   : > { %v984_v0 = vsel %vm959_vm7, %v912_v38, %v914_v1 }
 0x107   : > { %523 = vrot.lane.b32.xlu0 %v2548_v7, %s2489_s12  ;;  %579 = vrot.lane.b32.xlu1 %v2560_v11, %s2491_s14 }
 0x108   : > { %1311 = vmatpush1.bf16.msra.mxu1 %v984_v0 }
 0x109   : > { %v2878_v42 = vpop.permute.xlu0 %923  ;;  %v920_v37 = vpop.permute.xlu1 %919 }
 0x10a   : > { %3763 = vst [vmem:[#allocation19_spill] sm:$0xff] %v2878_v42  ;;  %v988_v3 = vsel %vm959_vm7, %v922_v51, %v2878_v42  ;;  %v987_v61 = vsel %vm959_vm7, %v920_v37, %v922_v51 }
 0x10b   : > { %542 = vrot.lane.b32.xlu0 %v2552_v8, %s2490_s13  ;;  %540 = vrot.lane.b32.xlu1 %v2558_v10, %s2490_s13 }
 0x10c   : > { %1312 = vmatprep.subr.bf16.mxu1 %v988_v3 }
 0x10d   : > { %1313 = vmatpush1.bf16.msra.mxu1 %v987_v61 }
 0x10f   : > { %581 = vrot.lane.b32.xlu0 %v2546_v2, %s2491_s14  ;;  %569 = vrot.lane.b32.xlu1 %v2581_v16, %s2491_s14 }
 0x113   : > { %550 = vrot.lane.b32.xlu0 %v2578_v15, %s2490_s13  ;;  %567 = vrot.lane.b32.xlu1 %v2593_v20, %s2491_s14 }
 0x117   : > { %548 = vrot.lane.b32.xlu0 %v2596_v21, %s2490_s13  ;;  %600 = vrot.lane.b32.xlu1 %v2571_v13, %s2492_s17 }
 0x11b   : > { %598 = vrot.lane.b32.xlu0 %v2564_v12, %s2492_s17  ;;  %608 = vrot.lane.b32.xlu1 %v2584_v17, %s2492_s17 }
 0x11d   : > { %v938_v61 = vpop.permute.xlu1 %937 }
 0x11f   : > { %606 = vrot.lane.b32.xlu0 %v2575_v14, %s2492_s17  ;;  %627 = vrot.lane.b32.xlu1 %v2587_v18, %s2493_s18 }
 0x121   : > { %v2909_v0 = vpop.permute.xlu0 %939  ;;  %v936_v51 = vpop.permute.xlu1 %935 }
 0x122   : > { %3764 = vst [vmem:[#allocation20_spill] sm:$0xff] %v2909_v0 }
 0x123   : > { %625 = vrot.lane.b32.xlu0 %v2590_v19, %s2493_s18  ;;  %575 = vrot.lane.b32.xlu1 %v2554_v9, %s2491_s14 }
 0x125   : > { %v946_v37 = vpop.permute.xlu0 %945 }
 0x127   : > { %577 = vrot.lane.b32.xlu0 %v2548_v7, %s2491_s14  ;;  %633 = vrot.lane.b32.xlu1 %v2560_v11, %s2493_s18 }
 0x129   : > { %v2919_v1 = vpop.permute.xlu1 %947  ;;  %v944_v3 = vpop.permute.xlu0 %943 }
 0x12b   : > { %596 = vrot.lane.b32.xlu0 %v2552_v8, %s2492_s17  ;;  %594 = vrot.lane.b32.xlu1 %v2558_v10, %s2492_s17 }
 0x12d   : > { %v952_v38 = vpop.permute.xlu1 %951 }
 0x12f   : > { %635 = vrot.lane.b32.xlu0 %v2546_v2, %s2493_s18  ;;  %623 = vrot.lane.b32.xlu1 %v2581_v16, %s2493_s18 }
 0x131   : > { %v954_v42 = vpop.permute.xlu0 %953  ;;  %v2927_v57 = vpop.permute.xlu1 %955 }
 0x133   : > { %604 = vrot.lane.b32.xlu0 %v2578_v15, %s2492_s17  ;;  %621 = vrot.lane.b32.xlu1 %v2593_v20, %s2493_s18 }
 0x135   : > { %v930_v55 = vpop.permute.xlu0 %929  ;;  %v2932_v50 = vpop.permute.xlu1 %931 }
 0x136   : > { %3765 = vst [vmem:[#allocation21_spill] sm:$0xff] %v2932_v50  ;;  %v991_v60 = vsel %vm959_vm7, %v930_v55, %v2932_v50  ;;  %v994_v50 = vsel %vm959_vm7, %v938_v61, %v2909_v0 }
 0x137   : > { %602 = vrot.lane.b32.xlu0 %v2596_v21, %s2492_s17  ;;  %654 = vrot.lane.b32.xlu1 %v2571_v13, %s2494_s19 }
 0x138   : > { %1314 = vmatprep.subr.bf16.mxu1 %v991_v60 }
 0x139   : > { %v928_v6 = vpop.permute.xlu0 %927  ;;  %v354_v5 = vpop.permute.xlu1 %353 }
 0x13a   : > { %v990_v48 = vsel %vm959_vm7, %v928_v6, %v930_v55  ;;  %v369_v60 = vsel %vm367_vm8, %v354_v5, %v2805_v62 }
 0x13b   : > { %652 = vrot.lane.b32.xlu0 %v2564_v12, %s2494_s19  ;;  %662 = vrot.lane.b32.xlu1 %v2584_v17, %s2494_s19 }
 0x13c   : > { %1315 = vmatpush1.bf16.msra.mxu1 %v990_v48  ;;  %v993_v48 = vsel %vm959_vm7, %v936_v51, %v938_v61  ;;  %v1000_v51 = vsel %vm959_vm7, %v954_v42, %v2927_v57 }
 0x13d   : > { %1316 = vmatprep.subr.bf16.mxu1 %v994_v50  ;;  %v335_v25 = vpop.permute.xlu0 %334  ;;  %v352_v63 = vpop.permute.xlu1 %351  ;;  %v997_v50 = vsel %vm959_vm7, %v946_v37, %v2919_v1 }
 0x13e   : > { %v345_v55 = vsel %vm340_vm6, %v335_v25, %v2797_v58  ;;  %v368_v53 = vsel %vm367_vm8, %v352_v63, %v354_v5  ;;  %v999_v63 = vsel %vm959_vm7, %v952_v38, %v954_v42  ;;  %v3766_v38 = vmov 0  }
 0x13f   : > { %660 = vrot.lane.b32.xlu0 %v2575_v14, %s2494_s19  ;;  %681 = vrot.lane.b32.xlu1 %v2587_v18, %s2495_s20  ;;  %v2956_v6 = vsel %vm702_vm4, %v345_v55, %v369_v60  ;;  %v996_v18 = vsel %vm959_vm7, %v944_v3, %v946_v37 }
 0x140   : > { %1317 = vmatpush1.bf16.msra.mxu1 %v993_v48  ;;  %1196 = vmatprep.subr.bf16.mxu0 %v2956_v6 }
 0x141   : > { %1318 = vmatprep.subr.bf16.mxu1 %v997_v50  ;;  %v333_v0 = vpop.permute.xlu0 %332  ;;  %v2961_v56 = vpop.permute.xlu1 %384  ;;  %v3066_v50 = vld [vmem:[%s3715_s1 + $0x60] ss:$0 sps:$4 sm:$0xff]  }
 0x142   : > { %v344_v39 = vsel %vm340_vm6, %v333_v0, %v335_v25  ;;  %v3010_v0 = vsel %vm702_vm4, %v2584_v17, %v2737_v4  ;;  %v3025_v17 = vld [vmem:[%s3715_s1 + $0x38] ss:$20 sps:$4 sm:$0xff]  }
 0x143   : > { %679 = vrot.lane.b32.xlu0 %v2590_v19, %s2495_s20  ;;  %629 = vrot.lane.b32.xlu1 %v2554_v9, %s2493_s18  ;;  %v2971_v61 = vsel %vm702_vm4, %v344_v39, %v368_v53  ;;  %v1177_v39 = vsel %vm702_vm4, %v999_v63, 0  ;;  %v2990_v53 = vld [vmem:[%s3715_s1 + $0x10] ss:$20 sps:$4 sm:$0xff]  }
 0x144   : > { %1319 = vmatpush1.bf16.msra.mxu1 %v996_v18  ;;  %1197 = vmatpush1.bf16.msra.mxu0 %v2971_v61  ;;  %v346_v18 = vsel %vm340_vm6, %v2797_v58, %v2795_v54 }
 0x145   : > { %2229 = vmatprep.subr.msk.bf16.mxu1 %vm702_vm4, %v1000_v51  ;;  %v2978_v25 = vpop.permute.xlu0 %382  ;;  %v2980_v19 = vpop.permute.xlu1 %392 }
 0x147   : > { %631 = vrot.lane.b32.xlu0 %v2548_v7, %s2493_s18  ;;  %687 = vrot.lane.b32.xlu1 %v2560_v11, %s2495_s20  ;;  %v316_v11 = vsel %vm313_vm5, %v2742_v23, %v2737_v4 }
 0x148   : > { %1321 = vmatpush1.bf16.msra.mxu1 %v1177_v39  ;;  %v713_v23 = vsel %vm702_vm4, %v2575_v14, %v316_v11  ;;  %v319_v14 = vsel %vm313_vm5, %v2758_v36, %v2756_v32  ;;  %v343_v36 = vsel %vm340_vm6, %v2786_v52, %v2782_v47 }
 0x149   : > { %v2992_v5 = vpop.permute.xlu0 %390  ;;  %v2994_v42 = vpop.permute.xlu1 %411  ;;  %1371 = vmatprep.subr.bf16.mxu1 %v2571_v13 }
 0x14b   : > { %650 = vrot.lane.b32.xlu0 %v2552_v8, %s2494_s19  ;;  %648 = vrot.lane.b32.xlu1 %v2558_v10, %s2494_s19 }
 0x14c   : > { %2230 = vmatmul.mubr.msk.bf16.vlgmr.msra.gmra.mrb[0].mxu1 %vm1166_vm9, %v2990_v53 }
 0x14d   : > { %1372 = vmatpush1.bf16.msra.mxu1 %v2564_v12  ;;  %v3012_v37 = vpop.permute.xlu0 %409  ;;  %v360_v3 = vpop.permute.xlu1 %359  ;;  %1352 = vmatprep.mubr.bf16.mxu1 %v3766_v38 }
 0x14e   : > { %1373 = vmatprep.subr.bf16.mxu1 %v3010_v0 }
 0x14f   : > { %689 = vrot.lane.b32.xlu0 %v2546_v2, %s2495_s20  ;;  %677 = vrot.lane.b32.xlu1 %v2581_v16, %s2495_s20 }
 0x151   : > { %1374 = vmatpush1.bf16.msra.mxu1 %v713_v23  ;;  %v362_v4 = vpop.permute.xlu0 %361  ;;  %v379_v60 = vpop.permute.xlu1 %378 }
 0x152   : > { %1375 = vmatprep.subr.bf16.mxu1 %v2756_v32  ;;  %v3030_v55 = vsel %vm367_vm8, %v362_v4, %v2822_v28  ;;  %v3033_v2 = vsel %vm367_vm8, %v360_v3, %v362_v4 }
 0x153   : > { %658 = vrot.lane.b32.xlu0 %v2578_v15, %s2494_s19  ;;  %675 = vrot.lane.b32.xlu1 %v2593_v20, %s2495_s20 }
 0x154   : > { %1198 = vmatprep.subr.bf16.mxu0 %v3030_v55  ;;  %2231 = vmatmul.mubr.msk.bf16.gmra.mrb[4].mxu1 %vm1166_vm9, %v3025_v17 }
 0x155   : > { %1376 = vmatpush1.bf16.msra.mxu1 %v319_v14  ;;  %1199 = vmatpush1.bf16.msra.mxu0 %v3033_v2  ;;  %v381_v16 = vpop.permute.xlu0 %380  ;;  %v408_v48 = vpop.permute.xlu1 %407 }
 0x156   : > { %1377 = vmatprep.subr.bf16.mxu1 %v2782_v47  ;;  %v3049_v15 = vsel %vm394_vm10, %v381_v16, %v2978_v25  ;;  %v3052_v20 = vsel %vm394_vm10, %v379_v60, %v381_v16  ;;  %1362 = vmatprep.mubr.bf16.mxu1 %v3766_v38  ;;  %v423_v63 = vsel %vm421_vm0, %v408_v48, %v3012_v37  ;;  %v3773_v60 = vld [vmem:[#allocation14_spill] sm:$0xff] }
 0x157   : > { %656 = vrot.lane.b32.xlu0 %v2596_v21, %s2494_s19  ;;  %853 = vrot.lane.b32.xlu1 %v2571_v13, %s2486_s10  ;;  %v370_v21 = vsel %vm367_vm8, %v2805_v62, %v2803_v59  ;;  %v3078_v13 = vsel %vm702_vm4, %v2795_v54, %v2803_v59 }
 0x158   : > { %1200 = vmatprep.subr.bf16.mxu0 %v3049_v15  ;;  %v729_v54 = vsel %vm702_vm4, %v346_v18, %v370_v21  ;;  %v3777_v21 = vld [vmem:[#allocation6_spill] sm:$0xff] }
 0x159   : > { %1378 = vmatpush1.bf16.msra.mxu1 %v343_v36  ;;  %1201 = vmatpush1.bf16.msra.mxu0 %v3052_v20  ;;  %v389_v52 = vpop.permute.xlu0 %388  ;;  %v406_v51 = vpop.permute.xlu1 %405 }
 0x15a   : > { %1379 = vmatprep.subr.bf16.mxu1 %v3078_v13  ;;  %v399_v58 = vsel %vm394_vm10, %v389_v52, %v2992_v5 }
 0x15b   : > { %851 = vrot.lane.b32.xlu0 %v2564_v12, %s2486_s10  ;;  %859 = vrot.lane.b32.xlu1 %v713_v23, %s2486_s10  ;;  %v3089_v62 = vsel %vm702_vm4, %v399_v58, %v423_v63  ;;  %v422_v12 = vsel %vm421_vm0, %v406_v51, %v408_v48  ;;  %v3111_v23 = vsel %vm367_vm8, %v2822_v28, %v2861_v43  ;;  %v3776_v48 = vld [vmem:[#allocation4_spill] sm:$0xff] }
 0x15c   : > { %1202 = vmatprep.subr.bf16.mxu0 %v3089_v62  ;;  %2232 = vmatmul.mubr.msk.bf16.gmra.mrb[8].mxu1 %vm1166_vm9, %v3066_v50  ;;  %v3778_v58 = vld [vmem:[#allocation8_spill] sm:$0xff] }
 0x15d   : > { %1380 = vmatpush1.bf16.msra.mxu1 %v729_v54  ;;  %v387_v59 = vpop.permute.xlu0 %386  ;;  %v3095_v39 = vpop.permute.xlu1 %519  ;;  %1403 = vmatprep.mubr.bf16.mxu1 %v2886_v29 }
 0x15e   : > { %1381 = vmatprep.subr.bf16.mxu1 %v2861_v43  ;;  %v398_v11 = vsel %vm394_vm10, %v387_v59, %v389_v52 }
 0x15f   : > { %685 = vrot.lane.b32.xlu0 %v2548_v7, %s2495_s20  ;;  %683 = vrot.lane.b32.xlu1 %v2554_v9, %s2495_s20  ;;  %v3106_v3 = vsel %vm702_vm4, %v398_v11, %v422_v12  ;;  %v3127_v7 = vsel %vm394_vm10, %v2978_v25, %v2961_v56  ;;  %v424_v9 = vsel %vm421_vm0, %v3012_v37, %v2994_v42  ;;  %v3772_v37 = vld [vmem:[#allocation3_spill] sm:$0xff]  ;;  %vm664_vm0 = vcmask 932864  }
 0x160   : > { %1203 = vmatpush1.bf16.msra.mxu0 %v3106_v3 }
 0x161   : > { %1382 = vmatpush1.bf16.msra.mxu1 %v3111_v23  ;;  %v3115_v29 = vpop.permute.xlu0 %517  ;;  %v3117_v4 = vpop.permute.xlu1 %527  ;;  %1204 = vmatprep.subr.bf16.mxu0 %v2643_v26  ;;  %v3137_v26 = vsel %vm702_vm4, %v2980_v19, %v2994_v42 }
 0x162   : > { %1383 = vmatprep.subr.bf16.mxu1 %v2961_v56  ;;  %v532_v63 = vsel %vm529_vm11, %v3115_v29, %v3095_v39 }
 0x163   : > { %861 = vrot.lane.b32.xlu0 %v3010_v0, %s2486_s10  ;;  %867 = vrot.lane.b32.xlu1 %v319_v14, %s2486_s10  ;;  %v3775_v14 = vld [vmem:[#allocation9_spill] sm:$0xff] }
 0x164   : > { %1205 = vmatpush1.bf16.msra.mxu0 %v2654_v30  ;;  %v400_v30 = vsel %vm394_vm10, %v2992_v5, %v2980_v19 }
 0x165   : > { %1384 = vmatpush1.bf16.msra.mxu1 %v3127_v7  ;;  %v3139_v28 = vpop.permute.xlu0 %525  ;;  %v514_v0 = vpop.permute.xlu1 %513  ;;  %1206 = vmatprep.subr.bf16.mxu0 %v2657_v31  ;;  %v3151_v25 = vsel %vm702_vm4, %v400_v30, %v424_v9  ;;  %v3780_v9 = vld [vmem:[#allocation16_spill] sm:$0xff] }
 0x166   : > { %1385 = vmatprep.subr.bf16.mxu1 %v3137_v26 }
 0x167   : > { %849 = vrot.lane.b32.xlu0 %v2552_v8, %s2486_s10  ;;  %847 = vrot.lane.b32.xlu1 %v2558_v10, %s2486_s10 }
 0x168   : > { %1207 = vmatpush1.bf16.msra.mxu0 %v2666_v34  ;;  %v3767_v34 = vld [vmem:[#allocation2_spill] sm:$0xff] }
 0x169   : > { %1386 = vmatpush1.bf16.msra.mxu1 %v3151_v25  ;;  %v516_v31 = vpop.permute.xlu0 %515  ;;  %v3155_v42 = vpop.permute.xlu1 %546  ;;  %1208 = vmatprep.subr.bf16.mxu0 %v2745_v24 }
 0x16a   : > { %1387 = vmatprep.subr.bf16.mxu1 %v2640_v22 }
 0x16b   : > { %869 = vrot.lane.b32.xlu0 %v2756_v32, %s2486_s10  ;;  %875 = vrot.lane.b32.xlu1 %v343_v36, %s2486_s10 }
 0x16c   : > { %1209 = vmatpush1.bf16.msra.mxu0 %v2761_v41  ;;  %v3768_v41 = vld [vmem:[#allocation5_spill] sm:$0xff] }
 0x16d   : > { %1388 = vmatpush1.bf16.msra.mxu1 %v2647_v27  ;;  %v3164_v8 = vpop.permute.xlu0 %544  ;;  %v3166_v10 = vpop.permute.xlu1 %554  ;;  %1210 = vmatprep.subr.bf16.mxu0 %v2681_v46  ;;  %v531_v27 = vsel %vm529_vm11, %v516_v31, %v3115_v29  ;;  %v3181_v46 = vsel %vm702_vm4, %v3767_v34, %v2678_v40  ;;  %v3781_v29 = vld [vmem:[#allocation17_spill] sm:$0xff]  ;;  %v2404_v34 = vld [vmem:[%s3715_s1 + $0x2c] ss:$20 sps:$4 sm:$0xff]  }
 0x16e   : > { %1389 = vmatprep.subr.bf16.mxu1 %v2663_v33 }
 0x16f   : > { %857 = vrot.lane.b32.xlu0 %v2776_v44, %s2486_s10  ;;  %855 = vrot.lane.b32.xlu1 %v2780_v45, %s2486_s10  ;;  %v3770_v44 = vld [vmem:[#allocation11_spill] sm:$0xff]  ;;  %v3771_v45 = vld [vmem:[#allocation13_spill] sm:$0xff] }
 0x170   : > { %1211 = vmatpush1.bf16.msra.mxu0 %v2688_v49  ;;  %v3769_v49 = vld [vmem:[#allocation7_spill] sm:$0xff]  ;;  %v773_v40 = vsel %vm702_vm4, %v3770_v44, %v531_v27 }
 0x171   : > { %1390 = vmatpush1.bf16.msra.mxu1 %v2670_v35  ;;  %v3183_v24 = vpop.permute.xlu0 %552  ;;  %v3185_v32 = vpop.permute.xlu1 %573  ;;  %1212 = vmatprep.subr.bf16.mxu0 %v3768_v41  ;;  %v530_v35 = vsel %vm529_vm11, %v514_v0, %v516_v31  ;;  %v3782_v0 = vld [vmem:[#allocation12_spill] sm:$0xff]  ;;  %v535_v41 = vsel %vm529_vm11, %v3139_v28, %v3117_v4 }
 0x172   : > { %1391 = vmatprep.subr.bf16.mxu1 %v3181_v46  ;;  %v769_v16 = vsel %vm702_vm4, %v3775_v14, %v530_v35  ;;  %v777_v30 = vsel %vm702_vm4, %v3782_v0, %v532_v63 }
 0x173   : > { %877 = vrot.lane.b32.xlu0 %v2782_v47, %s2486_s10  ;;  %883 = vrot.lane.b32.xlu1 %v729_v54, %s2486_s10  ;;  %v3774_v47 = vld [vmem:[#allocation15_spill] sm:$0xff]  ;;  %v3779_v54 = vld [vmem:[#allocation10_spill] sm:$0xff] }
 0x174   : > { %1213 = vmatpush1.bf16.msra.mxu0 %v3769_v49  ;;  %v781_v59 = vsel %vm702_vm4, %v3779_v54, %v3095_v39  ;;  %v2401_v39 = vld [vmem:[%s3715_s1] ss:$20 sps:$4 sm:$0xff]  }
 0x175   : > { %1392 = vmatpush1.bf16.msra.mxu1 %v3771_v45  ;;  %v572_v19 = vpop.permute.xlu0 %571  ;;  %v522_v5 = vpop.permute.xlu1 %521  ;;  %1214 = vmatprep.subr.bf16.mxu0 %v773_v40  ;;  %v797_v40 = vsel %vm702_vm4, %v3166_v10, %v3185_v32 }
 0x176   : > { %1393 = vmatprep.subr.bf16.mxu1 %v3772_v37 }
 0x177   : > { %865 = vrot.lane.b32.xlu0 %v3773_v60, %s2486_s10  ;;  %863 = vrot.lane.b32.xlu1 %v3774_v47, %s2486_s10 }
 0x178   : > { %1215 = vmatpush1.bf16.msra.mxu0 %v769_v16 }
 0x179   : > { %1394 = vmatpush1.bf16.msra.mxu1 %v3776_v48  ;;  %v524_v36 = vpop.permute.xlu0 %523  ;;  %v3205_v18 = vpop.permute.xlu1 %579 }
 0x17a   : > { %1395 = vmatprep.subr.bf16.mxu1 %v3777_v21  ;;  %v534_v52 = vsel %vm529_vm11, %v524_v36, %v3139_v28  ;;  %v533_v51 = vsel %vm529_vm11, %v522_v5, %v524_v36  ;;  %v586_v28 = vsel %vm583_vm13, %v572_v19, %v3185_v32  ;;  %v1066_v32 = vld [vmem:[%s3715_s1 + $0x50] sm:$0xff] }
 0x17b   : > { %885 = vrot.lane.b32.xlu0 %v3078_v13, %s2486_s10  ;;  %891 = vrot.lane.b32.xlu1 %v3111_v23, %s2486_s10  ;;  %v2224_v16 = vcombine.low %v1066_v32, %v1066_v32 }
 0x17c   : > { %1216 = vmatprep.subr.bf16.mxu0 %v534_v52 }
 0x17d   : > { %1396 = vmatpush1.bf16.msra.mxu1 %v3778_v58  ;;  %1217 = vmatpush1.bf16.msra.mxu0 %v533_v51  ;;  %v543_v12 = vpop.permute.xlu0 %542  ;;  %v541_v11 = vpop.permute.xlu1 %540 }
 0x17e   : > { %1397 = vmatprep.subr.bf16.mxu1 %v781_v59  ;;  %v558_v13 = vsel %vm556_vm12, %v543_v12, %v3164_v8  ;;  %v557_v23 = vsel %vm556_vm12, %v541_v11, %v543_v12 }
 0x17f   : > { %873 = vrot.lane.b32.xlu0 %v3780_v9, %s2486_s10  ;;  %871 = vrot.lane.b32.xlu1 %v3781_v29, %s2486_s10 }
 0x180   : > { %1218 = vmatprep.subr.bf16.mxu0 %v558_v13 }
 0x181   : > { %1398 = vmatpush1.bf16.msra.mxu1 %v777_v30  ;;  %1219 = vmatpush1.bf16.msra.mxu0 %v557_v23  ;;  %v582_v31 = vpop.permute.xlu0 %581  ;;  %v570_v27 = vpop.permute.xlu1 %569 }
 0x182   : > { %1399 = vmatprep.subr.bf16.mxu1 %v3117_v4  ;;  %v585_v44 = vsel %vm583_vm13, %v570_v27, %v572_v19  ;;  %v589_v60 = vsel %vm583_vm13, %v3205_v18, %v582_v31 }
 0x183   : > { %893 = vrot.lane.b32.xlu0 %v2861_v43, %s2486_s10  ;;  %899 = vrot.lane.b32.xlu1 %v3127_v7, %s2486_s10  ;;  %v559_v7 = vsel %vm556_vm12, %v3164_v8, %v3155_v42 }
 0x184   : > { %1221 = vmatmul.mubr.bf16.vlgmr.msra.gmra.mrb[0].mxu0 %v2401_v39 }
 0x185   : > { %1400 = vmatpush1.bf16.msra.mxu1 %v535_v41  ;;  %v551_v35 = vpop.permute.xlu0 %550  ;;  %v568_v49 = vpop.permute.xlu1 %567  ;;  %1230 = vmatprep.mubr.bf16.mxu0 %v2404_v34 }
 0x186   : > { %1401 = vmatprep.subr.bf16.mxu1 %v3155_v42  ;;  %v561_v43 = vsel %vm556_vm12, %v551_v35, %v3183_v24  ;;  %v584_v5 = vsel %vm583_vm13, %v568_v49, %v570_v27  ;;  %v562_v42 = vsel %vm556_vm12, %v3183_v24, %v3166_v10  ;;  %v2406_v10 = vld [vmem:[%s3715_s1 + $0x28] ss:$20 sps:$4 sm:$0xff]  }
 0x187   : > { %881 = vrot.lane.b32.xlu0 %v2956_v6, %s2486_s10  ;;  %879 = vrot.lane.b32.xlu1 %v2971_v61, %s2486_s10  ;;  %v789_v4 = vsel %vm702_vm4, %v561_v43, %v585_v44  ;;  %v793_v19 = vsel %vm702_vm4, %v562_v42, %v586_v28  ;;  %v1069_v28 = vld [vmem:[%s3716_s2] sm:$0xff] }
 0x188   : > { %1249 = vmatprep.subr.bf16.mxu0 %v789_v4 }
 0x189   : > { %1402 = vmatpush1.bf16.msra.mxu1 %v559_v7  ;;  %v549_v45 = vpop.permute.xlu0 %548  ;;  %v601_v6 = vpop.permute.xlu1 %600  ;;  %v1070_v7 = vld [vmem:[%s3716_s2 + $0x8] sm:$0xff] }
 0x18a   : > { %1432 = vmatprep.subr.bf16.mxu1 %v797_v40  ;;  %v560_v61 = vsel %vm556_vm12, %v549_v45, %v551_v35  ;;  %v1071_v45 = vld [vmem:[%s3716_s2 + $0x10] sm:$0xff] }
 0x18b   : > { %901 = vrot.lane.b32.xlu0 %v2961_v56, %s2486_s10  ;;  %907 = vrot.lane.b32.xlu1 %v3151_v25, %s2486_s10  ;;  %v785_v8 = vsel %vm702_vm4, %v560_v61, %v584_v5  ;;  %v2225_v25 = vcombine.high %v1066_v32, %v1066_v32  ;;  %v1072_v61 = vld [vmem:[%s3716_s2 + $0x18] sm:$0xff]  ;;  %v1073_v32 = vld [vmem:[%s3716_s2 + $0x20] sm:$0xff] }
 0x18c   : > { %1404 = vmatmul.mubr.bf16.vlgmr.msra.gmra.mrb[12].mxu1 %v2401_v39  ;;  %1250 = vmatpush1.bf16.msra.mxu0 %v785_v8 }
 0x18d   : > { %1433 = vmatpush1.bf16.msra.mxu1 %v793_v19  ;;  %v599_v24 = vpop.permute.xlu0 %598  ;;  %v609_v56 = vpop.permute.xlu1 %608  ;;  %1413 = vmatprep.mubr.bf16.mxu1 %v2404_v34 }
 0x18e   : > { %1434 = vmatprep.subr.bf16.mxu1 %v582_v31  ;;  %1231 = vmatmul.mubr.bf16.gmra.mrb[4].mxu0 %v2406_v10 }
 0x18f   : > { %889 = vrot.lane.b32.xlu0 %v3030_v55, %s2486_s10  ;;  %887 = vrot.lane.b32.xlu1 %v3033_v2, %s2486_s10  ;;  %v613_v2 = vsel %vm610_vm14, %v599_v24, %v601_v6 }
 0x190   : > { %1240 = vmatprep.mubr.bf16.mxu0 %v2225_v25 }
 0x191   : > { %1435 = vmatpush1.bf16.msra.mxu1 %v589_v60  ;;  %v607_v47 = vpop.permute.xlu0 %606  ;;  %v628_v14 = vpop.permute.xlu1 %627  ;;  %v1908_v60 = vld [vmem:[%s3719_s5 + $0x8] sm:$0xff] }
 0x192   : > { %1436 = vmatprep.subr.bf16.mxu1 %v601_v6  ;;  %v813_v55 = vsel %vm702_vm4, %v609_v56, %v628_v14  ;;  %v616_v52 = vsel %vm610_vm14, %v607_v47, %v609_v56 }
 0x193   : > { %909 = vrot.lane.b32.xlu0 %v3137_v26, %s2486_s10  ;;  %917 = vrot.lane.b32.xlu1 %v2640_v22, %s2486_s10  ;;  %v2411_v22 = vld [vmem:[%s3715_s1 + $0xc] ss:$20 sps:$4 sm:$0xff]  }
 0x194   : > { %1414 = vmatmul.mubr.bf16.gmra.mrb[16].mxu1 %v2406_v10 }
 0x195   : > { %1437 = vmatpush1.bf16.msra.mxu1 %v613_v2  ;;  %v626_v48 = vpop.permute.xlu0 %625  ;;  %v576_v36 = vpop.permute.xlu1 %575  ;;  %1423 = vmatprep.mubr.bf16.mxu1 %v2225_v25 }
 0x196   : > { %1438 = vmatprep.subr.bf16.mxu1 %v813_v55  ;;  %v640_v51 = vsel %vm637_vm15, %v626_v48, %v628_v14  ;;  %1241 = vmatmul.mubr.bf16.gmra.mrb[8].mxu0 %v2224_v16  ;;  %v1909_v55 = vld [vmem:[%s3719_s5 + $0x10] sm:$0xff] }
 0x197   : > { %897 = vrot.lane.b32.xlu0 %v3049_v15, %s2486_s10  ;;  %905 = vrot.lane.b32.xlu1 %v3089_v62, %s2486_s10  ;;  %v809_v26 = vsel %vm702_vm4, %v616_v52, %v640_v51  ;;  %v1911_v52 = vld [vmem:[%s3719_s5 + $0x20] sm:$0xff] }
 0x198   : > { %1281 = vmatprep.mubr.bf16.mxu0 %v2411_v22 }
 0x199   : > { %1439 = vmatpush1.bf16.msra.mxu1 %v809_v26  ;;  %v578_v63 = vpop.permute.xlu0 %577  ;;  %v3301_v58 = vpop.permute.xlu1 %633 }
 0x19a   : > { %v587_v59 = vsel %vm583_vm13, %v576_v36, %v578_v63  ;;  %v588_v12 = vsel %vm583_vm13, %v578_v63, %v3205_v18  ;;  %v1912_v63 = vld [vmem:[%s3719_s5 + $0x28] sm:$0xff] }
 0x19b   : > { %895 = vrot.lane.b32.xlu0 %v3052_v20, %s2486_s10  ;;  %903 = vrot.lane.b32.xlu1 %v3106_v3, %s2486_s10 }
 0x19c   : > { %1251 = vmatprep.subr.bf16.mxu0 %v588_v12  ;;  %1424 = vmatmul.mubr.bf16.gmra.mrb[20].mxu1 %v2224_v16  ;;  %v1910_v16 = vld [vmem:[%s3719_s5 + $0x18] sm:$0xff]  ;;  %v1913_v12 = vld [vmem:[%s3719_s5 + $0x30] sm:$0xff] }
 0x19d   : > { %1252 = vmatpush1.bf16.msra.mxu0 %v587_v59  ;;  %v597_v15 = vpop.permute.xlu0 %596  ;;  %v595_v62 = vpop.permute.xlu1 %594  ;;  %1464 = vmatprep.mubr.bf16.mxu1 %v2411_v22 }
 0x19e   : > { %v611_v11 = vsel %vm610_vm14, %v595_v62, %v597_v15  ;;  %v612_v13 = vsel %vm610_vm14, %v597_v15, %v599_v24  ;;  %v1907_v24 = vld [vmem:[%s3719_s5] sm:$0xff] }
 0x19f   : > { %925 = vrot.lane.b32.xlu0 %v2663_v33, %s2486_s10  ;;  %941 = vrot.lane.b32.xlu1 %v3772_v37, %s2486_s10 }
 0x1a0   : > { %1253 = vmatprep.subr.bf16.mxu0 %v612_v13  ;;  %v1914_v13 = vld [vmem:[%s3719_s5 + $0x38] sm:$0xff] }
 0x1a1   : > { %1254 = vmatpush1.bf16.msra.mxu0 %v611_v11  ;;  %v636_v20 = vpop.permute.xlu0 %635  ;;  %v624_v3 = vpop.permute.xlu1 %623 }
 0x1a2   : > { %v643_v18 = vsel %vm637_vm15, %v3301_v58, %v636_v20  ;;  %1440 = vmatprep.subr.bf16.mxu1 %v636_v20  ;;  %v639_v9 = vsel %vm637_vm15, %v624_v3, %v626_v48 }
 0x1a3   : > { %933 = vrot.lane.b32.xlu0 %v3181_v46, %s2486_s10  ;;  %957 = vrot.lane.b32.xlu1 %v3779_v54, %s2486_s10 }
 0x1a4   : > { %1441 = vmatpush1.bf16.msra.mxu1 %v643_v18  ;;  %v1915_v18 = vld [vmem:[%s3719_s5 + $0x40] sm:$0xff] }
 0x1a5   : > { %v605_v23 = vpop.permute.xlu0 %604  ;;  %v622_v33 = vpop.permute.xlu1 %621 }
 0x1a6   : > { %v615_v37 = vsel %vm610_vm14, %v605_v23, %v607_v47  ;;  %v638_v46 = vsel %vm637_vm15, %v622_v33, %v624_v3  ;;  %v1916_v33 = vld [vmem:[%s3719_s5 + $0x48] sm:$0xff] }
 0x1a7   : > { %949 = vrot.lane.b32.xlu0 %v3777_v21, %s2486_s10  ;;  %v805_v29 = vsel %vm702_vm4, %v615_v37, %v639_v9  ;;  %1081 = vperm.xlu1 %2381, %v1070_v7   ;;  %s2353_s10 = smul.u32 80, %s3788_s22 }
 0x1a8   : > { %1255 = vmatprep.subr.bf16.mxu0 %v805_v29 }
 0x1a9   : > { %v603_v0 = vpop.permute.xlu0 %602  ;;  %v655_v30 = vpop.permute.xlu1 %654  ;;  %s3689_s18 = scalar_lea.vmem %s3720_s6, %s2353_s10 }
 0x1aa   : > { %v614_v39 = vsel %vm610_vm14, %v603_v0, %v605_v23  ;;  %1442 = vmatprep.subr.bf16.mxu1 %v655_v30 }
 0x1ab   : > { %v801_v54 = vsel %vm702_vm4, %v614_v39, %v638_v46  ;;  %1076 = vperm.xlu0 %2380, %v1069_v28   ;;  %1086 = vperm.xlu1 %2381, %v1071_v45  }
 0x1ac   : > { %1256 = vmatpush1.bf16.msra.mxu0 %v801_v54 }
 0x1ad   : > { %v653_v31 = vpop.permute.xlu0 %652  ;;  %v663_v27 = vpop.permute.xlu1 %662 }
 0x1ae   : > { %v667_v34 = vsel %vm664_vm0, %v653_v31, %v655_v30 }
 0x1af   : > { %1443 = vmatpush1.bf16.msra.mxu1 %v667_v34  ;;  %1091 = vperm.xlu0 %2380, %v1072_v61  }
 0x1b0   : > { %1096 = vperm.xlu1 %2381, %v1073_v32  }
 0x1b1   : > { %v661_v21 = vpop.permute.xlu0 %660  ;;  %v682_v41 = vpop.permute.xlu1 %681 }
 0x1b2   : > { %v829_v35 = vsel %vm702_vm4, %v663_v27, %v682_v41  ;;  %v670_v43 = vsel %vm664_vm0, %v661_v21, %v663_v27 }
 0x1b3   : > { %1444 = vmatprep.subr.bf16.mxu1 %v829_v35  ;;  %1919 = vperm.xlu0 %2380, %v1907_v24  }
 0x1b4   : > { %1924 = vperm.xlu1 %2381, %v1908_v60  }
 0x1b5   : > { %v680_v49 = vpop.permute.xlu0 %679  ;;  %v630_v44 = vpop.permute.xlu1 %629 }
 0x1b6   : > { %v694_v4 = vsel %vm691_vm1, %v680_v49, %v682_v41 }
 0x1b7   : > { %v825_v40 = vsel %vm702_vm4, %v670_v43, %v694_v4  ;;  %1929 = vperm.xlu0 %2380, %v1909_v55  }
 0x1b8   : > { %1445 = vmatpush1.bf16.msra.mxu1 %v825_v40  ;;  %1934 = vperm.xlu1 %2381, %v1910_v16  }
 0x1b9   : > { %v632_v6 = vpop.permute.xlu0 %631  ;;  %v688_v5 = vpop.permute.xlu1 %687 }
 0x1ba   : > { %v641_v42 = vsel %vm637_vm15, %v630_v44, %v632_v6  ;;  %v642_v8 = vsel %vm637_vm15, %v632_v6, %v3301_v58 }
 0x1bb   : > { %1257 = vmatprep.subr.bf16.mxu0 %v642_v8  ;;  %1939 = vperm.xlu0 %2380, %v1911_v52  }
 0x1bc   : > { %1258 = vmatpush1.bf16.msra.mxu0 %v641_v42  ;;  %1944 = vperm.xlu1 %2381, %v1912_v63  }
 0x1bd   : > { %v651_v19 = vpop.permute.xlu0 %650  ;;  %v649_v10 = vpop.permute.xlu1 %648 }
 0x1be   : > { %v665_v56 = vsel %vm664_vm0, %v649_v10, %v651_v19  ;;  %v666_v25 = vsel %vm664_vm0, %v651_v19, %v653_v31 }
 0x1bf   : > { %1259 = vmatprep.subr.bf16.mxu0 %v666_v25  ;;  %1949 = vperm.xlu0 %2380, %v1913_v12  }
 0x1c0   : > { %1260 = vmatpush1.bf16.msra.mxu0 %v665_v56  ;;  %1954 = vperm.xlu1 %2381, %v1914_v13  }
 0x1c1   : > { %v690_v47 = vpop.permute.xlu0 %689  ;;  %v678_v14 = vpop.permute.xlu1 %677 }
 0x1c2   : > { %v697_v2 = vsel %vm691_vm1, %v688_v5, %v690_v47  ;;  %1446 = vmatprep.subr.bf16.mxu1 %v690_v47  ;;  %v693_v51 = vsel %vm691_vm1, %v678_v14, %v680_v49 }
 0x1c3   : > { %1447 = vmatpush1.bf16.msra.mxu1 %v697_v2  ;;  %1959 = vperm.xlu0 %2380, %v1915_v18  }
 0x1c4   : > { %1964 = vperm.xlu1 %2381, %v1916_v33   ;;  %v1067_v33 = vld [vmem:[%s3715_s1 + $0x58] sm:$0xff] }
 0x1c5   : > { %v659_v48 = vpop.permute.xlu0 %658  ;;  %v676_v36 = vpop.permute.xlu1 %675 }
 0x1c6   : > { %v669_v22 = vsel %vm664_vm0, %v659_v48, %v661_v21  ;;  %v692_v15 = vsel %vm691_vm1, %v676_v36, %v678_v14 }
 0x1c7   : > { %v821_v26 = vsel %vm702_vm4, %v669_v22, %v693_v51 }
 0x1c8   : > { %1261 = vmatprep.subr.bf16.mxu0 %v821_v26 }
 0x1c9   : > { %v657_v58 = vpop.permute.xlu0 %656  ;;  %v854_v59 = vpop.permute.xlu1 %853 }
 0x1ca   : > { %v668_v62 = vsel %vm664_vm0, %v657_v58, %v659_v48  ;;  %1448 = vmatprep.subr.bf16.mxu1 %v854_v59 }
 0x1cb   : > { %v817_v11 = vsel %vm702_vm4, %v668_v62, %v692_v15  ;;  %v2409_v15 = vld [vmem:[%s3715_s1 + $0x8] ss:$20 sps:$4 sm:$0xff]  }
 0x1cc   : > { %1262 = vmatpush1.bf16.msra.mxu0 %v817_v11  ;;  %v2412_v62 = vld [vmem:[%s3715_s1 + $0x34] ss:$20 sps:$4 sm:$0xff]  }
 0x1cd   : > { %v852_v20 = vpop.permute.xlu0 %851  ;;  %v860_v3 = vpop.permute.xlu1 %859 }
 0x1ce   : > { %v962_v23 = vsel %vm959_vm7, %v852_v20, %v854_v59 }
 0x1cf   : > { %1449 = vmatpush1.bf16.msra.mxu1 %v962_v23 }
 0x1d1   : > { %v686_v9 = vpop.permute.xlu0 %685  ;;  %v684_v37 = vpop.permute.xlu1 %683 }
 0x1d2   : > { %v695_v29 = vsel %vm691_vm1, %v684_v37, %v686_v9  ;;  %v696_v0 = vsel %vm691_vm1, %v686_v9, %v688_v5  ;;  %v2414_v37 = vld [vmem:[%s3715_s1 + $0x30] ss:$20 sps:$4 sm:$0xff]  }
 0x1d3   : > { %1263 = vmatprep.subr.bf16.mxu0 %v696_v0 }
 0x1d4   : > { %1264 = vmatpush1.bf16.msra.mxu0 %v695_v29 }
 0x1d5   : > { %v862_v30 = vpop.permute.xlu0 %861  ;;  %v868_v46 = vpop.permute.xlu1 %867 }
 0x1d6   : > { %v965_v39 = vsel %vm959_vm7, %v860_v3, %v862_v30  ;;  %1450 = vmatprep.subr.bf16.mxu1 %v862_v30  ;;  %v2227_v30 = vcombine.high %v1067_v33, %v1067_v33 }
 0x1d7   : > { %1451 = vmatpush1.bf16.msra.mxu1 %v965_v39 }
 0x1d9   : > { %v850_v54 = vpop.permute.xlu0 %849  ;;  %v848_v31 = vpop.permute.xlu1 %847 }
 0x1da   : > { %v960_v27 = vsel %vm959_vm7, %v848_v31, %v850_v54  ;;  %v961_v34 = vsel %vm959_vm7, %v850_v54, %v852_v20  ;;  %v3783_v20 = vld [vmem:[#allocation18_spill] sm:$0xff]  ;;  %v3784_v54 = vld [vmem:[#allocation19_spill] sm:$0xff] }
 0x1db   : > { %1265 = vmatprep.subr.bf16.mxu0 %v961_v34 }
 0x1dc   : > { %1266 = vmatpush1.bf16.msra.mxu0 %v960_v27 }
 0x1dd   : > { %v870_v21 = vpop.permute.xlu0 %869  ;;  %v876_v41 = vpop.permute.xlu1 %875 }
 0x1de   : > { %v968_v35 = vsel %vm959_vm7, %v868_v46, %v870_v21  ;;  %1452 = vmatprep.subr.bf16.mxu1 %v870_v21  ;;  %v3785_v21 = vld [vmem:[#allocation21_spill] sm:$0xff] }
 0x1df   : > { %1453 = vmatpush1.bf16.msra.mxu1 %v968_v35  ;;  %v2226_v35 = vcombine.low %v1067_v33, %v1067_v33 }
 0x1e1   : > { %v858_v49 = vpop.permute.xlu0 %857  ;;  %v856_v44 = vpop.permute.xlu1 %855 }
 0x1e2   : > { %v963_v43 = vsel %vm959_vm7, %v856_v44, %v858_v49  ;;  %v964_v4 = vsel %vm959_vm7, %v858_v49, %v860_v3  ;;  %v3786_v49 = vld [vmem:[#allocation20_spill] sm:$0xff] }
 0x1e3   : > { %1267 = vmatprep.subr.bf16.mxu0 %v964_v4 }
 0x1e4   : > { %1268 = vmatpush1.bf16.msra.mxu0 %v963_v43 }
 0x1e5   : > { %v878_v7 = vpop.permute.xlu0 %877  ;;  %v884_v28 = vpop.permute.xlu1 %883 }
 0x1e6   : > { %v971_v40 = vsel %vm959_vm7, %v876_v41, %v878_v7  ;;  %1454 = vmatprep.subr.bf16.mxu1 %v878_v7 }
 0x1e7   : > { %1455 = vmatpush1.bf16.msra.mxu1 %v971_v40 }
 0x1e9   : > { %v866_v45 = vpop.permute.xlu0 %865  ;;  %v864_v6 = vpop.permute.xlu1 %863 }
 0x1ea   : > { %v966_v5 = vsel %vm959_vm7, %v864_v6, %v866_v45  ;;  %v967_v61 = vsel %vm959_vm7, %v866_v45, %v868_v46 }
 0x1eb   : > { %1269 = vmatprep.subr.bf16.mxu0 %v967_v61 }
 0x1ec   : > { %1270 = vmatpush1.bf16.msra.mxu0 %v966_v5 }
 0x1ed   : > { %v886_v42 = vpop.permute.xlu0 %885  ;;  %v892_v8 = vpop.permute.xlu1 %891 }
 0x1ee   : > { %v974_v32 = vsel %vm959_vm7, %v884_v28, %v886_v42  ;;  %1456 = vmatprep.subr.bf16.mxu1 %v886_v42 }
 0x1ef   : > { %1457 = vmatpush1.bf16.msra.mxu1 %v974_v32 }
 0x1f1   : > { %v874_v19 = vpop.permute.xlu0 %873  ;;  %v872_v10 = vpop.permute.xlu1 %871 }
 0x1f2   : > { %v969_v24 = vsel %vm959_vm7, %v872_v10, %v874_v19  ;;  %v970_v56 = vsel %vm959_vm7, %v874_v19, %v876_v41 }
 0x1f3   : > { %1271 = vmatprep.subr.bf16.mxu0 %v970_v56 }
 0x1f4   : > { %1272 = vmatpush1.bf16.msra.mxu0 %v969_v24 }
 0x1f5   : > { %v894_v25 = vpop.permute.xlu0 %893  ;;  %v900_v60 = vpop.permute.xlu1 %899 }
 0x1f6   : > { %v977_v47 = vsel %vm959_vm7, %v892_v8, %v894_v25  ;;  %1458 = vmatprep.subr.bf16.mxu1 %v894_v25 }
 0x1f7   : > { %1459 = vmatpush1.bf16.msra.mxu1 %v977_v47 }
 0x1f9   : > { %v882_v14 = vpop.permute.xlu0 %881  ;;  %v880_v55 = vpop.permute.xlu1 %879 }
 0x1fa   : > { %v972_v2 = vsel %vm959_vm7, %v880_v55, %v882_v14  ;;  %v973_v16 = vsel %vm959_vm7, %v882_v14, %v884_v28 }
 0x1fb   : > { %1273 = vmatprep.subr.bf16.mxu0 %v973_v16 }
 0x1fc   : > { %1274 = vmatpush1.bf16.msra.mxu0 %v972_v2 }
 0x1fd   : > { %v902_v48 = vpop.permute.xlu0 %901  ;;  %v908_v36 = vpop.permute.xlu1 %907 }
 0x1fe   : > { %v980_v52 = vsel %vm959_vm7, %v900_v60, %v902_v48  ;;  %1460 = vmatprep.subr.bf16.mxu1 %v902_v48 }
 0x1ff   : > { %1461 = vmatpush1.bf16.msra.mxu1 %v980_v52 }
 0x201   : > { %v890_v51 = vpop.permute.xlu0 %889  ;;  %v888_v22 = vpop.permute.xlu1 %887 }
 0x202   : > { %v975_v26 = vsel %vm959_vm7, %v888_v22, %v890_v51  ;;  %v976_v63 = vsel %vm959_vm7, %v890_v51, %v892_v8 }
 0x203   : > { %1275 = vmatprep.subr.bf16.mxu0 %v976_v63 }
 0x204   : > { %1276 = vmatpush1.bf16.msra.mxu0 %v975_v26 }
 0x205   : > { %v910_v58 = vpop.permute.xlu0 %909  ;;  %v918_v59 = vpop.permute.xlu1 %917 }
 0x206   : > { %v983_v12 = vsel %vm959_vm7, %v908_v36, %v910_v58  ;;  %1462 = vmatprep.subr.bf16.mxu1 %v910_v58  ;;  %v986_v3 = vsel %vm959_vm7, %v3783_v20, %v918_v59 }
 0x207   : > { %1463 = vmatpush1.bf16.msra.mxu1 %v983_v12 }
 0x208   : > { %1493 = vmatprep.subr.bf16.mxu1 %v918_v59 }
 0x209   : > { %v898_v11 = vpop.permute.xlu0 %897  ;;  %v906_v13 = vpop.permute.xlu1 %905 }
 0x20a   : > { %v979_v18 = vsel %vm959_vm7, %v898_v11, %v900_v60  ;;  %1465 = vmatmul.mubr.bf16.vlgmr.msra.gmra.mrb[12].mxu1 %v2409_v15  ;;  %v982_v0 = vsel %vm959_vm7, %v906_v13, %v908_v36 }
 0x20b   : > { %1277 = vmatprep.subr.bf16.mxu0 %v979_v18  ;;  %1494 = vmatpush1.bf16.msra.mxu1 %v986_v3 }
 0x20c   : > { %1474 = vmatprep.mubr.bf16.mxu1 %v2412_v62 }
 0x20d   : > { %v896_v23 = vpop.permute.xlu0 %895  ;;  %v904_v29 = vpop.permute.xlu1 %903 }
 0x20e   : > { %v978_v9 = vsel %vm959_vm7, %v896_v23, %v898_v11  ;;  %v981_v39 = vsel %vm959_vm7, %v904_v29, %v906_v13 }
 0x20f   : > { %1278 = vmatpush1.bf16.msra.mxu0 %v978_v9 }
 0x210   : > { %1279 = vmatprep.subr.bf16.mxu0 %v982_v0 }
 0x211   : > { %v926_v46 = vpop.permute.xlu0 %925  ;;  %v942_v34 = vpop.permute.xlu1 %941 }
 0x212   : > { %v989_v31 = vsel %vm959_vm7, %v3784_v54, %v926_v46  ;;  %1495 = vmatprep.subr.bf16.mxu1 %v926_v46  ;;  %1475 = vmatmul.mubr.bf16.gmra.mrb[16].mxu1 %v2414_v37  ;;  %v995_v44 = vsel %vm959_vm7, %v3786_v49, %v942_v34 }
 0x213   : > { %1280 = vmatpush1.bf16.msra.mxu0 %v981_v39  ;;  %1496 = vmatpush1.bf16.msra.mxu1 %v989_v31 }
 0x214   : > { %1484 = vmatprep.mubr.bf16.mxu1 %v2227_v30 }
 0x215   : > { %v934_v27 = vpop.permute.xlu0 %933  ;;  %v958_v4 = vpop.permute.xlu1 %957 }
 0x216   : > { %v992_v41 = vsel %vm959_vm7, %v3785_v21, %v934_v27  ;;  %1282 = vmatmul.mubr.bf16.vlgmr.msra.gmra.mrb[0].mxu0 %v2409_v15  ;;  %1497 = vmatprep.subr.bf16.mxu1 %v934_v27  ;;  %v1001_v28 = vsel %vm959_vm7, %v2927_v57, %v958_v4 }
 0x217   : > { %1498 = vmatpush1.bf16.msra.mxu1 %v992_v41  ;;  %1291 = vmatprep.mubr.bf16.mxu0 %v2412_v62  ;;  %v1183_v5 = vsel %vm702_vm4, %v1001_v28, 0 }
 0x218   : > { %1499 = vmatprep.subr.bf16.mxu1 %v942_v34 }
 0x219   : > { %v950_v43 = vpop.permute.xlu0 %949 }
 0x21a   : > { %1485 = vmatmul.mubr.bf16.gmra.mrb[20].mxu1 %v2226_v35  ;;  %v998_v7 = vsel %vm959_vm7, %v2919_v1, %v950_v43 }
 0x21b   : > { %1500 = vmatpush1.bf16.msra.mxu1 %v995_v44  ;;  %1525 = vmatprep.mubr.bf16.mxu1 %v3766_v38 }
 0x21c   : > { %1501 = vmatprep.subr.bf16.mxu1 %v950_v43 }
 0x21e   : > { %1292 = vmatmul.mubr.bf16.gmra.mrb[4].mxu0 %v2414_v37 }
 0x21f   : > { %1502 = vmatpush1.bf16.msra.mxu1 %v998_v7  ;;  %1301 = vmatprep.mubr.bf16.mxu0 %v2227_v30  ;;  %v1344_v40 = vpop.f32.mrb[0].mxu1 }
 0x220   : > { %2233 = vmatprep.subr.msk.bf16.mxu1 %vm702_vm4, %v958_v4  ;;  %v1346_v45 = vpop.f32.mrb[1].mxu1 }
 0x221   : > { %v1348_v6 = vpop.f32.mrb[2].mxu1 }
 0x222   : > { %v1350_v61 = vpop.f32.mrb[3].mxu1 }
 0x223   : > { %1504 = vmatpush1.bf16.msra.mxu1 %v1183_v5 }
 0x226   : > { %1302 = vmatmul.mubr.bf16.gmra.mrb[8].mxu0 %v2226_v35  ;;  %2234 = vmatmul.mubr.msk.bf16.vlgmr.msra.gmra.mrb[12].mxu1 %vm1166_vm9, %v2990_v53  ;;  %v3459_v47 = vpop.permute.xlu1 %1081 }
 0x227   : > { %1535 = vmatprep.mubr.bf16.mxu1 %v3766_v38  ;;  %v1354_v1 = vpop.f32.mrb[4].mxu1  ;;  %1758 = vmatprep.mubr.bf16.mxu0 %v3766_v38 }
 0x228   : > { %v1356_v57 = vpop.f32.mrb[5].mxu1 }
 0x229   : > { %v1358_v42 = vpop.f32.mrb[6].mxu1 }
 0x22a   : > { %v1360_v8 = vpop.f32.mrb[7].mxu1  ;;  %v1077_v53 = vpop.permute.xlu0 %1076 }
 0x22b   : > { %v3473_v26 = vpop.permute.xlu1 %1086 }
 0x22e   : > { %2235 = vmatmul.mubr.msk.bf16.gmra.mrb[16].mxu1 %vm1166_vm9, %v3025_v17  ;;  %v3478_v11 = vpop.permute.xlu0 %1091 }
 0x22f   : > { %1545 = vmatprep.mubr.bf16.mxu1 %v3766_v38  ;;  %v3452_v32 = vpop.f32.mrb[8].mxu1  ;;  %v3493_v31 = vpop.permute.xlu1 %1096 }
 0x230   : > { %v3454_v19 = vpop.f32.mrb[9].mxu1 }
 0x231   : > { %v1368_v10 = vpop.f32.mrb[10].mxu1 }
 0x232   : > { %v1369_v24 = vpop.f32.mrb[11].mxu1 }
 0x236   : > { %2236 = vmatmul.mubr.msk.bf16.gmra.mrb[20].mxu1 %vm1166_vm9, %v3066_v50 }
 0x237   : > { %1819 = vmatprep.mubr.bf16.mxu1 %v3766_v38 }
 0x2e9   : > { %v1283_v56 = vpop.f32.mrb[0].mxu0 }
 0x2ea   : > { %v2286_v25 = vadd.f32 %v1283_v56, %v1077_v53  ;;  %v1285_v60 = vpop.f32.mrb[1].mxu0 }
 0x2eb   : > { %v2288_v17 = vadd.f32 %v1285_v60, %v1077_v53  ;;  %v1287_v14 = vpop.f32.mrb[2].mxu0 }
 0x2ec   : > { %v3461_v55 = vadd.f32 %v2286_v25, %v1344_v40  ;;  %v2290_v2 = vadd.f32 %v1287_v14, %v3459_v47  ;;  %v1289_v16 = vpop.f32.mrb[3].mxu0 }
 0x2ed   : > { %v3464_v48 = vadd.f32 %v2288_v17, %v1346_v45  ;;  %v2292_v36 = vadd.f32 %v1289_v16, %v3459_v47 }
 0x2ee   : > { %v3467_v50 = vadd.f32 %v2290_v2, %v1348_v6  ;;  %v1574_v52 = vmin.f32 %v3461_v55, 0.0  ;;  %vm1554_vm2 = vcmp.gt.f32.partialorder %v3461_v55, 0.0 }
 0x2ef   : > { %v3470_v51 = vadd.f32 %v2292_v36, %v1350_v61  ;;  %v1575_v63 = vmin.f32 %v3464_v48, 0.0  ;;  %vm1555_vm5 = vcmp.gt.f32.partialorder %v3464_v48, 0.0 }
 0x2f0   : > { %v1578_v22 = vmin.f32 %v3467_v50, 0.0  ;;  %v1594_v13 = vmul.f32 1.442695, %v1574_v52  ;;  %vm1558_vm3 = vcmp.gt.f32.partialorder %v3467_v50, 0.0 }
 0x2f1   : > { %v1293_v58 = vpop.f32.mrb[4].mxu0  ;;  %v1579_v12 = vmin.f32 %v3470_v51, 0.0  ;;  %v1596_v9 = vmul.f32 1.442695, %v1575_v63  ;;  %vm1559_vm6 = vcmp.gt.f32.partialorder %v3470_v51, 0.0 }
 0x2f2   : > { %v1602_v59 = vmul.f32 1.442695, %v1578_v22  ;;  %v2294_v15 = vadd.f32 %v1293_v58, %v3473_v26  ;;  %v1295_v62 = vpop.f32.mrb[5].mxu0 }
 0x2f3   : > { %v2296_v20 = vadd.f32 %v1295_v62, %v3473_v26  ;;  %v1297_v3 = vpop.f32.mrb[6].mxu0  ;;  %v1604_v0 = vmul.f32 1.442695, %v1579_v12 }
 0x2f4   : > { %v3481_v18 = vadd.f32 %v2294_v15, %v1354_v1  ;;  %v2298_v23 = vadd.f32 %v1297_v3, %v3478_v11  ;;  %v1299_v33 = vpop.f32.mrb[7].mxu0  ;;  %2431 = vpow2.f32 %v1602_v59 }
 0x2f5   : > { %v3484_v37 = vadd.f32 %v2296_v20, %v1356_v57  ;;  %v2300_v29 = vadd.f32 %v1299_v33, %v3478_v11  ;;  %2433 = vpow2.f32 %v1594_v13 }
 0x2f6   : > { %v1582_v30 = vmin.f32 %v3481_v18, 0.0  ;;  %v3488_v46 = vadd.f32 %v2298_v23, %v1358_v42  ;;  %2435 = vpow2.f32 %v1596_v9  ;;  %vm1562_vm7 = vcmp.gt.f32.partialorder %v3481_v18, 0.0 }
 0x2f7   : > { %v1583_v39 = vmin.f32 %v3484_v37, 0.0  ;;  %v3491_v54 = vadd.f32 %v2300_v29, %v1360_v8  ;;  %2437 = vpow2.f32 %v1604_v0  ;;  %vm1563_vm9 = vcmp.gt.f32.partialorder %v3484_v37, 0.0 }
 0x2f8   : > { %v1610_v27 = vmul.f32 1.442695, %v1582_v30  ;;  %v1586_v34 = vmin.f32 %v3488_v46, 0.0  ;;  %vm1566_vm8 = vcmp.gt.f32.partialorder %v3488_v46, 0.0 }
 0x2f9   : > { %v1587_v21 = vmin.f32 %v3491_v54, 0.0  ;;  %v1303_v41 = vpop.f32.mrb[8].mxu0  ;;  %v1527_v35 = vpop.f32.mrb[12].mxu1  ;;  %v1612_v28 = vmul.f32 1.442695, %v1583_v39  ;;  %vm1567_vm10 = vcmp.gt.f32.partialorder %v3491_v54, 0.0 }
 0x2fa   : > { %v1618_v49 = vmul.f32 1.442695, %v1586_v34  ;;  %v2302_v44 = vadd.f32 %v1303_v41, %v3493_v31  ;;  %v3498_v43 = vadd.f32 %v1527_v35, %v1077_v53  ;;  %v1305_v4 = vpop.f32.mrb[9].mxu0  ;;  %v1529_v7 = vpop.f32.mrb[13].mxu1  ;;  %2439 = vpow2.f32 %v1610_v27 }
 0x2fb   : > { %v2304_v40 = vadd.f32 %v1305_v4, %v3493_v31  ;;  %v3501_v45 = vadd.f32 %v1529_v7, %v1077_v53  ;;  %v1307_v6 = vpop.f32.mrb[10].mxu0  ;;  %v1531_v5 = vpop.f32.mrb[14].mxu1  ;;  %v1620_v8 = vmul.f32 1.442695, %v1587_v21 }
 0x2fc   : > { %2441 = vpow2.f32 %v1618_v49  ;;  %v3504_v61 = vadd.f32 %v2302_v44, %v3452_v32  ;;  %v1576_v1 = vmin.f32 %v3498_v43, 0.0  ;;  %v1308_v57 = vpop.f32.mrb[11].mxu0  ;;  %v1533_v42 = vpop.f32.mrb[15].mxu1  ;;  %v3515_v14 = vadd.f32 %v1531_v5, %v3459_v47 }
 0x2fd   : > { %v3508_v10 = vadd.f32 %v2304_v40, %v3454_v19  ;;  %v1577_v53 = vmin.f32 %v3501_v45, 0.0  ;;  %2443 = vpow2.f32 %v1612_v28  ;;  %v3519_v16 = vadd.f32 %v1533_v42, %v3459_v47 }
 0x2fe   : > { %v1590_v24 = vmin.f32 %v3504_v61, 0.0  ;;  %v1598_v56 = vmul.f32 1.442695, %v1576_v1  ;;  %v2432_v32 = vpop.eup %2431  ;;  %v1580_v52 = vmin.f32 %v3515_v14, 0.0  ;;  %vm1570_vm11 = vcmp.gt.f32.partialorder %v3504_v61, 0.0 }
 0x2ff   : > { %v1591_v25 = vmin.f32 %v3508_v10, 0.0  ;;  %v1600_v17 = vmul.f32 1.442695, %v1577_v53  ;;  %v2434_v2 = vpop.eup %2433  ;;  %v2241_v59 = vadd.f32 -1.0, %v2432_v32  ;;  %v1581_v12 = vmin.f32 %v3519_v16, 0.0 }
 0x300   : > { %v1626_v60 = vmul.f32 1.442695, %v1590_v24  ;;  %2445 = vpow2.f32 %v1598_v56  ;;  %v2436_v58 = vpop.eup %2435  ;;  %v2237_v13 = vadd.f32 -1.0, %v2434_v2  ;;  %v1606_v20 = vmul.f32 1.442695, %v1580_v52 }
 0x301   : > { %2447 = vpow2.f32 %v1620_v8  ;;  %v1628_v19 = vmul.f32 1.442695, %v1591_v25  ;;  %v1537_v36 = vpop.f32.mrb[16].mxu1  ;;  %v2438_v62 = vpop.eup %2437  ;;  %v1608_v9 = vmul.f32 1.442695, %v1581_v12  ;;  %v1658_v27 = vsel %vm1558_vm3, %v3467_v50, %v2241_v59 }
 0x302   : > { %2449 = vpow2.f32 %v1626_v60  ;;  %v3525_v22 = vadd.f32 %v1537_v36, %v3473_v26  ;;  %v1539_v63 = vpop.f32.mrb[17].mxu1  ;;  %v2238_v21 = vadd.f32 -1.0, %v2436_v58  ;;  %v1654_v41 = vsel %vm1554_vm2, %v3461_v55, %v2237_v13 }
 0x303   : > { %2451 = vpow2.f32 %v1628_v19  ;;  %v3529_v47 = vadd.f32 %v1539_v63, %v3473_v26  ;;  %v1541_v15 = vpop.f32.mrb[18].mxu1  ;;  %v2242_v4 = vadd.f32 -1.0, %v2438_v62  ;;  %vm1556_vm12 = vcmp.gt.f32.partialorder %v3498_v43, 0.0 }
 0x304   : > { %2453 = vpow2.f32 %v1600_v17  ;;  %v1584_v3 = vmin.f32 %v3525_v22, 0.0  ;;  %v1543_v23 = vpop.f32.mrb[19].mxu1  ;;  %v2440_v33 = vpop.eup %2439  ;;  %v3536_v30 = vadd.f32 %v1541_v15, %v3478_v11  ;;  %vm1571_vm13 = vcmp.gt.f32.partialorder %v3508_v10, 0.0 }
 0x305   : > { %v1585_v29 = vmin.f32 %v3529_v47, 0.0  ;;  %2455 = vpow2.f32 %v1606_v20  ;;  %v3539_v39 = vadd.f32 %v1543_v23, %v3478_v11  ;;  %v2245_v44 = vadd.f32 -1.0, %v2440_v33 }
 0x306   : > { %v2442_v0 = vpop.eup %2441  ;;  %v1614_v26 = vmul.f32 1.442695, %v1584_v3  ;;  %2457 = vpow2.f32 %v1608_v9  ;;  %v1588_v11 = vmin.f32 %v3536_v30, 0.0  ;;  %v1679_v55 = vpack.c.bf16 %v1658_v27, %v1654_v41 }
 0x307   : > { %v1616_v34 = vmul.f32 1.442695, %v1585_v29  ;;  %v2249_v35 = vadd.f32 -1.0, %v2442_v0  ;;  %v2444_v49 = vpop.eup %2443  ;;  %v1589_v50 = vmin.f32 %v3539_v39, 0.0  ;;  %v1655_v42 = vsel %vm1555_vm5, %v3464_v48, %v2238_v21 }
 0x308   : > { %2459 = vpow2.f32 %v1614_v26  ;;  %v1622_v40 = vmul.f32 1.442695, %v1588_v11  ;;  %v1659_v8 = vsel %vm1559_vm6, %v3470_v51, %v2242_v4  ;;  %v1662_v48 = vsel %vm1562_vm7, %v3481_v18, %v2245_v44 }
 0x309   : > { %2461 = vpow2.f32 %v1616_v34  ;;  %v1547_v7 = vpop.f32.mrb[20].mxu1  ;;  %v1624_v57 = vmul.f32 1.442695, %v1589_v50  ;;  %v1666_v25 = vsel %vm1566_vm8, %v3488_v46, %v2249_v35  ;;  %v1680_v32 = vpack.c.bf16 %v1659_v8, %v1655_v42  ;;  %v2417_v50 = vld [vmem:[%s3717_s3] sm:$0xff]  }
 0x30a   : > { %v2446_v28 = vpop.eup %2445  ;;  %v3555_v6 = vadd.f32 %v1547_v7, %v3493_v31  ;;  %v1549_v5 = vpop.f32.mrb[21].mxu1  ;;  %2463 = vpow2.f32 %v1622_v40  ;;  %v2246_v63 = vadd.f32 -1.0, %v2444_v49  ;;  %v1683_v12 = vpack.c.bf16 %v1666_v25, %v1662_v48  ;;  %v2427_v48 = vld [vmem:[%s3718_s4 + $0x38] sm:$0xff]  }
 0x30b   : > { %v2448_v1 = vpop.eup %2447  ;;  %v3564_v24 = vadd.f32 %v1549_v5, %v3493_v31  ;;  %v1551_v56 = vpop.f32.mrb[22].mxu1  ;;  %v2239_v51 = vadd.f32 -1.0, %v2446_v28  ;;  %2465 = vpow2.f32 %v1624_v57  ;;  %1726 = vmatprep.subr.bf16.mxu0 %v1680_v32  ;;  %vm1557_vm14 = vcmp.gt.f32.partialorder %v3501_v45, 0.0  ;;  %v2419_v32 = vld [vmem:[%s3717_s3 + $0x10] ss:$0 sps:$4 sm:$0xff]  }
 0x30c   : > { %v2450_v53 = vpop.eup %2449  ;;  %v1592_v60 = vmin.f32 %v3555_v6, 0.0  ;;  %v1552_v17 = vpop.f32.mrb[23].mxu1  ;;  %v2250_v46 = vadd.f32 -1.0, %v2448_v1  ;;  %1727 = vmatpush1.bf16.msra.mxu0 %v1679_v55  ;;  %v1663_v13 = vsel %vm1563_vm9, %v3484_v37, %v2246_v63  ;;  %vm1560_vm15 = vcmp.gt.f32.partialorder %v3515_v14, 0.0 }
 0x30d   : > { %v2452_v2 = vpop.eup %2451  ;;  %v1593_v31 = vmin.f32 %v3564_v24, 0.0  ;;  %v2253_v15 = vadd.f32 -1.0, %v2450_v53  ;;  %vm1561_vm0 = vcmp.gt.f32.partialorder %v3519_v16, 0.0  ;;  %vm1564_vm1 = vcmp.gt.f32.partialorder %v3525_v22, 0.0  ;;  %v2418_v53 = vld [vmem:[%s3717_s3 + $0x8] sm:$0xff]  }
 0x30e   : > { %v2454_v19 = vpop.eup %2453  ;;  %v2254_v36 = vadd.f32 -1.0, %v2452_v2  ;;  %v1630_v52 = vmul.f32 1.442695, %v1592_v60  ;;  %v1667_v20 = vsel %vm1567_vm10, %v3491_v54, %v2250_v46  ;;  %v1656_v54 = vsel %vm1556_vm12, %v3498_v43, %v2239_v51  ;;  %v2424_v60 = vld [vmem:[%s3718_s4 + $0x20] sm:$0xff]   ;;  %v2425_v17 = vld [vmem:[%s3718_s4 + $0x28] sm:$0xff]   ;;  %v2426_v2 = vld [vmem:[%s3718_s4 + $0x30] sm:$0xff]  }
 0x30f   : > { %v2240_v58 = vadd.f32 -1.0, %v2454_v19  ;;  %v1632_v59 = vmul.f32 1.442695, %v1593_v31  ;;  %v2456_v62 = vpop.eup %2455  ;;  %v1684_v9 = vpack.c.bf16 %v1667_v20, %v1663_v13  ;;  %v1670_v0 = vsel %vm1570_vm11, %v3504_v61, %v2253_v15  ;;  %v2428_v51 = vld [vmem:[%s3718_s4 + $0x40] sm:$0xff]   ;;  %v2429_v31 = vld [vmem:[%s3718_s4 + $0x48] sm:$0xff]  }
 0x310   : > { %v1671_v18 = vsel %vm1571_vm13, %v3508_v10, %v2254_v36  ;;  %2467 = vpow2.f32 %v1630_v52  ;;  %v2458_v3 = vpop.eup %2457  ;;  %v2243_v33 = vadd.f32 -1.0, %v2456_v62  ;;  %v1687_v27 = vpack.c.bf16 %v1670_v0, %v1670_v0  ;;  %v2430_v19 = vld [vmem:[%s3718_s4 + $0x50] ss:$0 sps:$4 sm:$0x77]  }
 0x311   : > { %v1688_v23 = vpack.c.bf16 %v1671_v18, %v1671_v18  ;;  %2469 = vpow2.f32 %v1632_v59  ;;  %v2244_v10 = vadd.f32 -1.0, %v2458_v3  ;;  %1728 = vmatprep.subr.bf16.mxu0 %v1684_v9  ;;  %v1657_v21 = vsel %vm1557_vm14, %v3501_v45, %v2240_v58 }
 0x312   : > { %v2460_v29 = vpop.eup %2459  ;;  %v1660_v26 = vsel %vm1560_vm15, %v3515_v14, %v2243_v33  ;;  %1729 = vmatpush1.bf16.msra.mxu0 %v1683_v12  ;;  %v1715_v11 = vsel %vm702_vm4, %v1687_v27, 0  ;;  %vm1568_vm2 = vcmp.gt.f32.partialorder %v3536_v30, 0.0  ;;  %vm1704_vm3 = vcmask 326656  }
 0x313   : > { %v2462_v37 = vpop.eup %2461  ;;  %v1681_v34 = vpack.c.bf16 %v1660_v26, %v1656_v54  ;;  %v1661_v41 = vsel %vm1561_vm0, %v3519_v16, %v2244_v10  ;;  %v2247_v35 = vadd.f32 -1.0, %v2460_v29  ;;  %2260 = vmatprep.subr.msk.bf16.mxu0 %vm702_vm4, %v1688_v23  ;;  %v2420_v16 = vld [vmem:[%s3718_s4] sm:$0xff]   ;;  %vm1565_vm5 = vcmp.gt.f32.partialorder %v3529_v47, 0.0 }
 0x314   : > { %v1682_v61 = vpack.c.bf16 %v1661_v41, %v1657_v21  ;;  %v2464_v49 = vpop.eup %2463  ;;  %v2248_v43 = vadd.f32 -1.0, %v2462_v37  ;;  %vm1569_vm6 = vcmp.gt.f32.partialorder %v3539_v39, 0.0  ;;  %vm1572_vm7 = vcmp.gt.f32.partialorder %v3555_v6, 0.0 }
 0x315   : > { %v2466_v44 = vpop.eup %2465  ;;  %v2251_v14 = vadd.f32 -1.0, %v2464_v49  ;;  %v1664_v4 = vsel %vm1564_vm1, %v3525_v22, %v2247_v35  ;;  %vm1573_vm8 = vcmp.gt.f32.partialorder %v3564_v24, 0.0  ;;  %vm2045_vm9 = vcmask 1041408  }
 0x316   : > { %1787 = vmatprep.subr.bf16.mxu1 %v1682_v61  ;;  %v2252_v45 = vadd.f32 -1.0, %v2466_v44  ;;  %1731 = vmatpush1.bf16.msra.mxu0 %v1715_v11  ;;  %v1665_v55 = vsel %vm1565_vm5, %v3529_v47, %v2248_v43  ;;  %vm2046_vm10 = vcmask 1042432   ;;  %v2496_v36 = vmov 65535  }
 0x317   : > { %1788 = vmatpush1.bf16.msra.mxu1 %v1681_v34  ;;  %v1668_v7 = vsel %vm1568_vm2, %v3536_v30, %v2251_v14  ;;  %2052 = vmatprep.subr.bf16.mxu0 %v3766_v38  ;;  %v2421_v30 = vld [vmem:[%s3718_s4 + $0x8] sm:$0xff]   ;;  %v2047_v52 = vsel %vm2045_vm9, 4294967295, %v2496_v36  ;;  %vm2030_vm11 = vcmask 302080   ;;  %vm2125_vm12 = vcmask 56320  }
 0x318   : > { %v1685_v40 = vpack.c.bf16 %v1668_v7, %v1664_v4  ;;  %v1669_v5 = vsel %vm1569_vm6, %v3539_v39, %v2252_v45  ;;  %v2048_v63 = vsel %vm2046_vm10, %v2047_v52, 0 }
 0x319   : > { %2261 = vmatmul.mubr.msk.bf16.vlgmr.msra.gmra.mrb[12].mxu0 %vm1704_vm3, %v2417_v50  ;;  %v1686_v42 = vpack.c.bf16 %v1669_v5, %v1665_v55  ;;  %v2050_v46 = vand.u32 %v2430_v19, %v2048_v63 }
 0x31a   : > { %v2468_v28 = vpop.eup %2467  ;;  %1768 = vmatprep.mubr.bf16.mxu0 %v3766_v38  ;;  %2053 = vmatpush1.bf16.msra.mxu0 %v2420_v16 }
 0x31b   : > { %v2470_v1 = vpop.eup %2469  ;;  %v2255_v57 = vadd.f32 -1.0, %v2468_v28  ;;  %1789 = vmatprep.subr.bf16.mxu1 %v1686_v42  ;;  %2054 = vmatprep.subr.bf16.mxu0 %v3766_v38 }
 0x31c   : > { %v2256_v22 = vadd.f32 -1.0, %v2470_v1  ;;  %1790 = vmatpush1.bf16.msra.mxu1 %v1685_v40 }
 0x31d   : > { %v1672_v8 = vsel %vm1572_vm7, %v3555_v6, %v2255_v57  ;;  %v2422_v6 = vld [vmem:[%s3718_s4 + $0x10] sm:$0xff]  }
 0x31e   : > { %v1689_v47 = vpack.c.bf16 %v1672_v8, %v1672_v8  ;;  %v1673_v39 = vsel %vm1573_vm8, %v3564_v24, %v2256_v22  ;;  %2055 = vmatpush1.bf16.msra.mxu0 %v2421_v30  ;;  %v2423_v24 = vld [vmem:[%s3718_s4 + $0x18] sm:$0xff]  }
 0x31f   : > { %v1690_v56 = vpack.c.bf16 %v1673_v39, %v1673_v39  ;;  %2056 = vmatprep.subr.bf16.mxu0 %v3766_v38 }
 0x320   : > { %v1721_v25 = vsel %vm702_vm4, %v1689_v47, 0 }
 0x321   : > { %2264 = vmatprep.subr.msk.bf16.mxu1 %vm702_vm4, %v1690_v56  ;;  %2262 = vmatmul.mubr.msk.bf16.gmra.mrb[16].mxu0 %vm1704_vm3, %v2418_v53 }
 0x322   : > { %1792 = vmatpush1.bf16.msra.mxu1 %v1721_v25  ;;  %1778 = vmatprep.mubr.bf16.mxu0 %v3766_v38 }
 0x323   : > { %2057 = vmatpush1.bf16.msra.mxu0 %v2422_v6 }
 0x324   : > { %2058 = vmatprep.subr.bf16.mxu0 %v3766_v38 }
 0x325   : > { %2265 = vmatmul.mubr.msk.bf16.vlgmr.msra.gmra.mrb[24].mxu1 %vm1704_vm3, %v2417_v50 }
 0x326   : > { %1829 = vmatprep.mubr.bf16.mxu1 %v3766_v38 }
 0x327   : > { %2059 = vmatpush1.bf16.msra.mxu0 %v2423_v24 }
 0x328   : > { %2060 = vmatprep.subr.bf16.mxu0 %v3766_v38 }
 0x329   : > { %2263 = vmatmul.mubr.msk.bf16.gmra.mrb[20].mxu0 %vm1704_vm3, %v2419_v32 }
 0x32b   : > { %2061 = vmatpush1.bf16.msra.mxu0 %v2424_v60 }
 0x32c   : > { %2062 = vmatprep.subr.bf16.mxu0 %v3766_v38 }
 0x32d   : > { %2266 = vmatmul.mubr.msk.bf16.gmra.mrb[28].mxu1 %vm1704_vm3, %v2418_v53  ;;  %v1920_v53 = vpop.permute.xlu0 %1919 }
 0x32e   : > { %1839 = vmatprep.mubr.bf16.mxu1 %v3766_v38 }
 0x32f   : > { %2063 = vmatpush1.bf16.msra.mxu0 %v2425_v17 }
 0x330   : > { %2064 = vmatprep.subr.bf16.mxu0 %v3766_v38 }
 0x333   : > { %2065 = vmatpush1.bf16.msra.mxu0 %v2426_v2 }
 0x334   : > { %2066 = vmatprep.subr.bf16.mxu0 %v3766_v38 }
 0x335   : > { %2267 = vmatmul.mubr.msk.bf16.gmra.mrb[32].mxu1 %vm1704_vm3, %v2419_v32  ;;  %v1925_v32 = vpop.permute.xlu1 %1924 }
 0x337   : > { %2067 = vmatpush1.bf16.msra.mxu0 %v2427_v48  ;;  %v1930_v48 = vpop.permute.xlu0 %1929 }
 0x338   : > { %2068 = vmatprep.subr.bf16.mxu0 %v3766_v38 }
 0x339   : > { %v1935_v36 = vpop.permute.xlu1 %1934 }
 0x33b   : > { %2069 = vmatpush1.bf16.msra.mxu0 %v2428_v51 }
 0x33c   : > { %2070 = vmatprep.subr.bf16.mxu0 %v3766_v38 }
 0x33f   : > { %2071 = vmatpush1.bf16.msra.mxu0 %v2429_v31 }
 0x340   : > { %2072 = vmatprep.subr.bf16.mxu0 %v3766_v38 }
 0x343   : > { %2073 = vmatpush1.bf16.msra.mxu0 %v2050_v46 }
 0x3ec   : > { %v1760_v58 = vpop.f32.mrb[12].mxu0 }
 0x3ed   : > { %v1762_v59 = vpop.f32.mrb[13].mxu0 }
 0x3ee   : > { %v1764_v12 = vpop.f32.mrb[14].mxu0 }
 0x3ef   : > { %v1848_v15 = vpack.c.bf16 %v1764_v12, %v1760_v58  ;;  %v1766_v62 = vpop.f32.mrb[15].mxu0  ;;  %v1940_v58 = vpop.permute.xlu0 %1939 }
 0x3f0   : > { %v1849_v18 = vpack.c.bf16 %v1766_v62, %v1762_v59  ;;  %v1945_v62 = vpop.permute.xlu1 %1944 }
 0x3f2   : > { %2279 = vmatprep.mubr.msk.bf16.mxu0 %vm2030_vm11, %v1849_v18 }
 0x3f3   : > { %2085 = vmatmul.mubr.bf16.vlgmr.msra.gmra.mrb[24].mxu0 %v1848_v15 }
 0x3f4   : > { %v1770_v38 = vpop.f32.mrb[16].mxu0 }
 0x3f5   : > { %v1772_v13 = vpop.f32.mrb[17].mxu0 }
 0x3f6   : > { %v1774_v20 = vpop.f32.mrb[18].mxu0 }
 0x3f7   : > { %v1852_v23 = vpack.c.bf16 %v1774_v20, %v1770_v38  ;;  %v1776_v33 = vpop.f32.mrb[19].mxu0  ;;  %v1950_v20 = vpop.permute.xlu0 %1949 }
 0x3f8   : > { %v1821_v3 = vpop.f32.mrb[24].mxu1  ;;  %v1853_v29 = vpack.c.bf16 %v1776_v33, %v1772_v13 }
 0x3f9   : > { %v1823_v9 = vpop.f32.mrb[25].mxu1 }
 0x3fa   : > { %v1825_v10 = vpop.f32.mrb[26].mxu1  ;;  %2280 = vmatprep.mubr.msk.bf16.mxu0 %vm2030_vm11, %v1853_v29 }
 0x3fb   : > { %v1850_v0 = vpack.c.bf16 %v1825_v10, %v1821_v3  ;;  %v1827_v37 = vpop.f32.mrb[27].mxu1  ;;  %2093 = vmatmul.mubr.bf16.gmra.mrb[28].mxu0 %v1852_v23 }
 0x3fc   : > { %v1851_v54 = vpack.c.bf16 %v1827_v37, %v1823_v9  ;;  %v1780_v34 = vpop.f32.mrb[20].mxu0  ;;  %v1955_v9 = vpop.permute.xlu1 %1954 }
 0x3fd   : > { %v1867_v26 = vrot.slane %v1850_v0, 4  ;;  %v1856_v21 = vpack.c.bf16 %v1780_v34, %v1780_v34  ;;  %v1782_v41 = vpop.f32.mrb[21].mxu0  ;;  %v1960_v37 = vpop.permute.xlu0 %1959 }
 0x3fe   : > { %v1868_v27 = vrot.slane %v1851_v54, 4  ;;  %v1857_v35 = vpack.c.bf16 %v1782_v41, %v1782_v41  ;;  %v1784_v11 = vpop.f32.mrb[22].mxu0 }
 0x3ff   : > { %v1881_v43 = vsel %vm702_vm4, %v1856_v21, %v1867_v26  ;;  %v1785_v44 = vpop.f32.mrb[23].mxu0 }
 0x400   : > { %v1831_v61 = vpop.f32.mrb[28].mxu1  ;;  %v1885_v14 = vsel %vm702_vm4, %v1857_v35, %v1868_v27  ;;  %v1965_v34 = vpop.permute.xlu1 %1964 }
 0x401   : > { %v1833_v49 = vpop.f32.mrb[29].mxu1  ;;  %2281 = vmatprep.mubr.msk.bf16.mxu0 %vm2030_vm11, %v1885_v14 }
 0x402   : > { %v1835_v50 = vpop.f32.mrb[30].mxu1 }
 0x403   : > { %v1854_v45 = vpack.c.bf16 %v1835_v50, %v1831_v61  ;;  %v1837_v16 = vpop.f32.mrb[31].mxu1  ;;  %2101 = vmatmul.mubr.bf16.gmra.mrb[32].mxu0 %v1881_v43 }
 0x404   : > { %v1855_v4 = vpack.c.bf16 %v1837_v16, %v1833_v49 }
 0x405   : > { %v1869_v7 = vrot.slane %v1854_v45, 4 }
 0x406   : > { %v1871_v28 = vrot.slane %v1855_v4, 4 }
 0x407   : > { %v1870_v40 = vsel %vm702_vm4, %v1867_v26, %v1869_v7 }
 0x408   : > { %v1841_v55 = vpop.f32.mrb[32].mxu1  ;;  %v1872_v5 = vsel %vm702_vm4, %v1868_v27, %v1871_v28 }
 0x409   : > { %v1858_v1 = vpack.c.bf16 %v1841_v55, %v1841_v55  ;;  %v1843_v57 = vpop.f32.mrb[33].mxu1  ;;  %2282 = vmatprep.mubr.msk.bf16.mxu0 %vm2030_vm11, %v1872_v5 }
 0x40a   : > { %v1859_v42 = vpack.c.bf16 %v1843_v57, %v1843_v57  ;;  %v1845_v22 = vpop.f32.mrb[34].mxu1 }
 0x40b   : > { %v1873_v30 = vrot.slane %v1858_v1, 4  ;;  %v1846_v8 = vpop.f32.mrb[35].mxu1  ;;  %2109 = vmatmul.mubr.bf16.gmra.mrb[36].mxu0 %v1870_v40 }
 0x40c   : > { %v1875_v47 = vrot.slane %v1859_v42, 4 }
 0x40d   : > { %v1874_v39 = vsel %vm702_vm4, %v1869_v7, %v1873_v30 }
 0x40e   : > { %v1876_v56 = vsel %vm702_vm4, %v1871_v28, %v1875_v47 }
 0x40f   : > { %2283 = vmatprep.mubr.msk.bf16.mxu0 %vm2030_vm11, %v1876_v56 }
 0x413   : > { %2117 = vmatmul.mubr.bf16.gmra.mrb[40].mxu0 %v1874_v39 }
 0x4c6   : > { %v2086_v25 = vpop.f32.mrb[24].mxu0 }
 0x4c7   : > { %v2087_v6 = vadd.f32 %v2086_v25, %v1920_v53  ;;  %v2088_v24 = vpop.f32.mrb[25].mxu0 }
 0x4c8   : > { %v2089_v60 = vpop.f32.mrb[26].mxu0 }
 0x4c9   : > { %2126 = vst.msk [vmem:[%s3689_s18] sm:$0xff] %vm2125_vm12, %v2087_v6  ;;  %v2090_v17 = vadd.f32 %v2089_v60, %v1925_v32  ;;  %v2091_v2 = vpop.f32.mrb[27].mxu0 }
 0x4cb   : > { %2127 = vst.msk [vmem:[%s3689_s18 + $0x8] sm:$0xff] %vm2125_vm12, %v2090_v17 }
 0x4ce   : > { %v2094_v51 = vpop.f32.mrb[28].mxu0 }
 0x4cf   : > { %v2095_v31 = vadd.f32 %v2094_v51, %v1930_v48  ;;  %v2096_v19 = vpop.f32.mrb[29].mxu0 }
 0x4d0   : > { %v2097_v52 = vpop.f32.mrb[30].mxu0 }
 0x4d1   : > { %2128 = vst.msk [vmem:[%s3689_s18 + $0x10] sm:$0xff] %vm2125_vm12, %v2095_v31  ;;  %v2098_v63 = vadd.f32 %v2097_v52, %v1935_v36  ;;  %v2099_v46 = vpop.f32.mrb[31].mxu0 }
 0x4d3   : > { %2129 = vst.msk [vmem:[%s3689_s18 + $0x18] sm:$0xff] %vm2125_vm12, %v2098_v63 }
 0x4d6   : > { %v2102_v59 = vpop.f32.mrb[32].mxu0 }
 0x4d7   : > { %v2103_v12 = vadd.f32 %v2102_v59, %v1940_v58  ;;  %v2104_v15 = vpop.f32.mrb[33].mxu0 }
 0x4d8   : > { %v2105_v18 = vpop.f32.mrb[34].mxu0 }
 0x4d9   : > { %2130 = vst.msk [vmem:[%s3689_s18 + $0x20] sm:$0xff] %vm2125_vm12, %v2103_v12  ;;  %v2106_v38 = vadd.f32 %v2105_v18, %v1945_v62  ;;  %v2107_v13 = vpop.f32.mrb[35].mxu0 }
 0x4db   : > { %2131 = vst.msk [vmem:[%s3689_s18 + $0x28] sm:$0xff] %vm2125_vm12, %v2106_v38 }
 0x4de   : > { %v2110_v3 = vpop.f32.mrb[36].mxu0 }
 0x4df   : > { %v2111_v23 = vadd.f32 %v2110_v3, %v1950_v20  ;;  %v2112_v33 = vpop.f32.mrb[37].mxu0 }
 0x4e0   : > { %v2113_v29 = vpop.f32.mrb[38].mxu0 }
 0x4e1   : > { %2132 = vst.msk [vmem:[%s3689_s18 + $0x30] sm:$0xff] %vm2125_vm12, %v2111_v23  ;;  %v2114_v10 = vadd.f32 %v2113_v29, %v1955_v9  ;;  %v2115_v0 = vpop.f32.mrb[39].mxu0 }
 0x4e3   : > { %2133 = vst.msk [vmem:[%s3689_s18 + $0x38] sm:$0xff] %vm2125_vm12, %v2114_v10 }
 0x4e6   : > { %v2118_v54 = vpop.f32.mrb[40].mxu0 }
 0x4e7   : > { %v2119_v26 = vadd.f32 %v2118_v54, %v1960_v37  ;;  %v2120_v27 = vpop.f32.mrb[41].mxu0 }
 0x4e8   : > { %v2121_v21 = vpop.f32.mrb[42].mxu0 }
 0x4e9   : > { %2134 = vst.msk [vmem:[%s3689_s18 + $0x40] sm:$0xff] %vm2125_vm12, %v2119_v26  ;;  %v2122_v41 = vadd.f32 %v2121_v21, %v1965_v34  ;;  %v2123_v35 = vpop.f32.mrb[43].mxu0 }
 0x4eb   : > { %2135 = vst.msk [vmem:[%s3689_s18 + $0x48] sm:$0xff] %vm2125_vm12, %v2122_v41 }
 0x4ec PF: > { %s16_s21 = sadd.s32 1, %s2477_s21  }
 0x4ed   : > { %p13_p4 = scmp.ge.s32.totalorder %s16_s21, 4  }
 0x4ef   :  { %15 = sbr.rel (!%p13_p4) target bundleno = 1 (0x1), region = 74 }

</bundles_post_ra>
